<compile_context>
chip_gen: v6e
topology: v6e:2x2x1
jax: 0.10.0
libtpu: 0.0.40
codegen_flags: <defaults>
</compile_context>

<pallas_src>
import functools

import jax
import jax.numpy as jnp
from jax import lax
from jax.experimental import pallas as pl
from jax.experimental.pallas import tpu as pltpu


def _round_up(x, m):
    return ((x + m - 1) // m) * m


def _lstm_chunk_kernel(x_ref,      # (Tc, Bblk, D)   bf16 time-chunk of x
                       wih_ref,    # (D, 4Hp)        W_ih^T (gate-padded), bf16
                       whh_ref,    # (Hp, 4Hp)       W_hh^T (gate-padded), bf16
                       b_ref,      # (1, 4Hp)        bias_ih + bias_hh, f32
                       fcw_ref,    # (1, Hp) or (Hp, O)  fc weight, f32
                       fcb_ref,    # (1, O)          fc bias, f32
                       out_ref,    # (Bblk, O)       f32
                       pg_ref,     # VMEM (Tc*Bblk, 4Hp) f32 pre-gates scratch
                       h_ref,      # VMEM (Bblk, Hp) f32 carried hidden state
                       c_ref,      # VMEM (Bblk, Hp) f32 carried cell state
                       *, seq_len, unroll):
    # grid = (batch_blocks ["parallel"], time_chunks ["arbitrary"])
    t_idx = pl.program_id(1)
    Tc, Bblk, D = x_ref.shape
    Hp = whh_ref.shape[0]

    @pl.when(t_idx == 0)
    def _init():
        h_ref[...] = jnp.zeros_like(h_ref)
        c_ref[...] = jnp.zeros_like(c_ref)

    # Hoisted input projection for this chunk: one MXU-friendly matmul covers
    # all Tc timesteps; bias folded in once (not re-broadcast per step).
    pg_ref[...] = (jnp.dot(x_ref[...].reshape(Tc * Bblk, D), wih_ref[...],
                           preferred_element_type=jnp.float32)
                   + b_ref[...])

    t_base = t_idx * Tc

    def step(t, carry):
        h, c = carry                                           # f32 (Bblk, Hp)
        row = pl.multiple_of(t * Bblk, 8)
        # W_hh re-read from VMEM each step (hidden behind the serial chain)
        # instead of pinning ~32 vregs across the whole unrolled loop.
        gates = pg_ref[pl.ds(row, Bblk), :] + jnp.dot(
            h.astype(whh_ref.dtype), whh_ref[...],
            preferred_element_type=jnp.float32)
        # PyTorch gate order: input, forget, cell (g), output.
        # Each slice is a full 128-lane tile (Hp is a multiple of 128).
        i_g = jax.nn.sigmoid(gates[:, 0 * Hp:1 * Hp])
        f_g = jax.nn.sigmoid(gates[:, 1 * Hp:2 * Hp])
        g_g = jnp.tanh(gates[:, 2 * Hp:3 * Hp])
        o_g = jax.nn.sigmoid(gates[:, 3 * Hp:4 * Hp])
        c_new = f_g * c + i_g * g_g
        h_new = o_g * jnp.tanh(c_new)
        # Mask time-padding rows at the ragged tail of the last chunk.
        valid = (t_base + t) < seq_len
        return jnp.where(valid, h_new, h), jnp.where(valid, c_new, c)

    h_T, c_T = lax.fori_loop(0, Tc, step, (h_ref[...], c_ref[...]),
                             unroll=unroll)
    h_ref[...] = h_T
    c_ref[...] = c_T

    @pl.when(t_idx == pl.num_programs(1) - 1)
    def _finalize():
        if fcw_ref.shape[0] == 1 and out_ref.shape[1] == 1:
            # O=1: VPU multiply + lane reduction beats an N=1 MXU matmul.
            logits = (jnp.sum(h_T * fcw_ref[...], axis=-1, keepdims=True)
                      + fcb_ref[...])
        else:
            logits = jnp.dot(h_T, fcw_ref[...],
                             preferred_element_type=jnp.float32) + fcb_ref[...]
        out_ref[...] = jax.nn.sigmoid(logits)


def binary_classification_rnn_forward(x, params):
    """x: (B, T, D) float32. Returns (1, B, O), matching PyTorch fc(hidden)."""
    B, T, D = x.shape
    O, H = params["fc_w"].shape

    Bp = max(8, _round_up(B, 8))       # sublane-aligned batch
    Hp = max(128, _round_up(H, 128))   # lane-aligned hidden (per-gate tiles)

    # ---- batch block: leading "parallel" grid axis (shards across TCs). ----
    BBLK_TARGET = 128
    if Bp <= BBLK_TARGET:
        Bblk = Bp
    else:
        Bblk = next(d for d in range(BBLK_TARGET, 7, -8) if Bp % d == 0)
    n_bblk = Bp // Bblk

    # ---- time chunk: bound the f32 pre-gates scratch (dominant VMEM user) ---
    # to ~8 MiB so the total footprint stays well under v7x's 64 MiB per-TC
    # VMEM while Pallas double-buffers the streamed x chunk behind compute.
    PG_BUDGET = 8 << 20
    per_step_bytes = Bblk * 4 * Hp * 4
    Tc = int(max(1, min(T, PG_BUDGET // per_step_bytes)))
    n_tc = -(-T // Tc)
    Tp = n_tc * Tc

    # Time-major padded input (Tp, Bp, D); padded time rows masked in-kernel,
    # padded batch rows sliced off at the end. Cast bf16 for the MXU feed.
    x_p = jnp.zeros((Tp, Bp, D), jnp.float32)
    x_p = x_p.at[:T, :B].set(jnp.transpose(x, (1, 0, 2)))
    x_p = x_p.astype(jnp.bfloat16)

    def pad_gates_T(w, in_dim, in_pad):
        # (4H, in_dim) -> (in_pad, 4Hp): each gate block placed at k*Hp,
        # padded rows/cols are zero (exactly preserves LSTM math).
        w4 = w.reshape(4, H, in_dim)
        wp = jnp.zeros((4, Hp, in_pad), w.dtype).at[:, :H, :in_dim].set(w4)
        return jnp.transpose(wp.reshape(4 * Hp, in_pad))

    w_ih_t = pad_gates_T(params["w_ih"], D, D).astype(jnp.bfloat16)   # (D, 4Hp)
    w_hh_t = pad_gates_T(params["w_hh"], H, Hp).astype(jnp.bfloat16)  # (Hp, 4Hp)

    b4 = (params["b_ih"] + params["b_hh"]).reshape(4, H)
    b = jnp.zeros((4, Hp), jnp.float32).at[:, :H].set(b4).reshape(1, 4 * Hp)

    if O == 1:
        fc_w = jnp.zeros((1, Hp), jnp.float32).at[:, :H].set(params["fc_w"])
    else:
        fc_w = jnp.zeros((Hp, O), jnp.float32).at[:H].set(params["fc_w"].T)
    fc_b = params["fc_b"].reshape(1, O)

    # ---- explicit VMEM limit from the real footprint (capped for v7x). ----
    bf2, f4 = 2, 4
    footprint = (
        2 * Tc * Bblk * D * bf2            # x chunk, double-buffered
        + 2 * D * 4 * Hp * bf2             # W_ih
        + 2 * Hp * 4 * Hp * bf2            # W_hh
        + 2 * 4 * Hp * f4                  # bias
        + 2 * int(fc_w.size) * f4 + 2 * int(fc_b.size) * f4
        + 2 * Bblk * O * f4                # out block
        + Tc * Bblk * 4 * Hp * f4          # pre-gates scratch
        + 2 * Bblk * Hp * f4)              # h, c scratch
    vmem_limit = int(min(64 << 20, max(2 * footprint + (4 << 20), 24 << 20)))

    kernel = functools.partial(_lstm_chunk_kernel, seq_len=T,
                               unroll=(Tc if Tc <= 8 else 4))

    out = pl.pallas_call(
        kernel,
        out_shape=jax.ShapeDtypeStruct((Bp, O), jnp.float32),
        grid=(n_bblk, n_tc),
        in_specs=[
            pl.BlockSpec((Tc, Bblk, D), lambda bb, tt: (tt, bb, 0)),
            pl.BlockSpec((D, 4 * Hp), lambda bb, tt: (0, 0)),
            pl.BlockSpec((Hp, 4 * Hp), lambda bb, tt: (0, 0)),
            pl.BlockSpec((1, 4 * Hp), lambda bb, tt: (0, 0)),
            pl.BlockSpec(fc_w.shape, lambda bb, tt: (0, 0)),
            pl.BlockSpec((1, O), lambda bb, tt: (0, 0)),
        ],
        out_specs=pl.BlockSpec((Bblk, O), lambda bb, tt: (bb, 0)),
        scratch_shapes=[
            pltpu.VMEM((Tc * Bblk, 4 * Hp), jnp.float32),   # pre-gates chunk
            pltpu.VMEM((Bblk, Hp), jnp.float32),            # h carry
            pltpu.VMEM((Bblk, Hp), jnp.float32),            # c carry
        ],
        compiler_params=pltpu.CompilerParams(
            dimension_semantics=("parallel", "arbitrary"),
            vmem_limit_bytes=vmem_limit),
    )(x_p, w_ih_t, w_hh_t, b, fc_w, fc_b)

    return out[:B].reshape(1, B, O)


def reference_forward(x, params):
    """Pure-JAX reference matching the kernel numerics (bf16-rounded matmul
    inputs, f32 accumulation / elementwise)."""
    B, T, D = x.shape
    O, H = params["fc_w"].shape
    hi = jax.lax.Precision.HIGHEST
    q = lambda a: a.astype(jnp.bfloat16).astype(jnp.float32)
    w_ih, w_hh = q(params["w_ih"]), q(params["w_hh"])
    b = (params["b_ih"] + params["b_hh"])[None, :]
    xq = q(x)
    h = jnp.zeros((B, H), jnp.float32)
    c = jnp.zeros((B, H), jnp.float32)
    for t in range(T):
        gates = (jnp.dot(xq[:, t, :], w_ih.T, precision=hi)
                 + jnp.dot(q(h), w_hh.T, precision=hi) + b)
        i_g = jax.nn.sigmoid(gates[:, 0 * H:1 * H])
        f_g = jax.nn.sigmoid(gates[:, 1 * H:2 * H])
        g_g = jnp.tanh(gates[:, 2 * H:3 * H])
        o_g = jax.nn.sigmoid(gates[:, 3 * H:4 * H])
        c = f_g * c + i_g * g_g
        h = o_g * jnp.tanh(c)
    logits = jnp.dot(h, params["fc_w"].T, precision=hi) + params["fc_b"][None, :]
    return jax.nn.sigmoid(logits).reshape(1, B, O)


def init_params(key, input_dim, hidden_dim, output_dim):
    """Deterministic init mimicking PyTorch default U(-1/sqrt(H), 1/sqrt(H))."""
    k = 1.0 / jnp.sqrt(jnp.float32(hidden_dim))
    keys = jax.random.split(key, 6)
    u = lambda kk, shape: jax.random.uniform(kk, shape, jnp.float32, -k, k)
    return {
        "w_ih": u(keys[0], (4 * hidden_dim, input_dim)),
        "w_hh": u(keys[1], (4 * hidden_dim, hidden_dim)),
        "b_ih": u(keys[2], (4 * hidden_dim,)),
        "b_hh": u(keys[3], (4 * hidden_dim,)),
        "fc_w": u(keys[4], (output_dim, hidden_dim)),
        "fc_b": u(keys[5], (output_dim,)),
    }


if __name__ == "__main__":
    B, T, D, H, O = 2, 8, 16, 32, 1
    key = jax.random.PRNGKey(0)
    k_x, k_p = jax.random.split(key)
    x = jax.random.normal(k_x, (B, T, D), dtype=jnp.float32)
    params = init_params(k_p, D, H, O)

    out = binary_classification_rnn_forward(x, params)
    out = jax.block_until_ready(out)

    assert out.shape == (1, B, O)
    assert bool(jnp.all(jnp.isfinite(out)))
    assert bool(jnp.all((out >= 0.0) & (out <= 1.0)))

    ref = jax.block_until_ready(reference_forward(x, params))
    assert float(jnp.max(jnp.abs(out - ref))) < 5e-3

    print("KERNEL_OK")
</pallas_src>

<mosaic_0001>
module attributes {stable_mosaic.version = 11 : i64} {
  func.func @_lstm_chunk_kernel(%arg0: i32, %arg1: i32, %arg2: memref<8x8x16xbf16, #tpu.memory_space<vmem>>, %arg3: memref<16x512xbf16, #tpu.memory_space<vmem>>, %arg4: memref<128x512xbf16, #tpu.memory_space<vmem>>, %arg5: memref<1x512xf32, #tpu.memory_space<vmem>>, %arg6: memref<1x128xf32, #tpu.memory_space<vmem>>, %arg7: memref<1x1xf32, #tpu.memory_space<vmem>>, %arg8: memref<8x1xf32, #tpu.memory_space<vmem>>, %arg9: memref<64x512xf32, #tpu.memory_space<vmem>>, %arg10: memref<8x128xf32, #tpu.memory_space<vmem>>, %arg11: memref<8x128xf32, #tpu.memory_space<vmem>>) attributes {dimension_semantics = [#tpu.dimension_semantics<parallel>, #tpu.dimension_semantics<arbitrary>], iteration_bounds = array<i64: 1, 1>, scalar_prefetch = 0 : i64, scratch_operands = 3 : i64, tpu.core_type = #tpu.core_type<tc>, window_params = [{transform_indices = @transform_0, window_bounds = array<i64: 8, 8, 16>}, {pipeline_mode = #tpu.pipeline_mode<synchronous>, transform_indices = @transform_1, window_bounds = array<i64: 16, 512>}, {pipeline_mode = #tpu.pipeline_mode<synchronous>, transform_indices = @transform_2, window_bounds = array<i64: 128, 512>}, {pipeline_mode = #tpu.pipeline_mode<synchronous>, transform_indices = @transform_3, window_bounds = array<i64: 1, 512>}, {pipeline_mode = #tpu.pipeline_mode<synchronous>, transform_indices = @transform_4, window_bounds = array<i64: 1, 128>}, {pipeline_mode = #tpu.pipeline_mode<synchronous>, transform_indices = @transform_5, window_bounds = array<i64: 1, 1>}, {transform_indices = @transform_6, window_bounds = array<i64: 8, 1>}]} {
    %c0_i32 = arith.constant 0 : i32
    %0 = arith.cmpi eq, %arg1, %c0_i32 : i32
    %1 = arith.extui %0 : i1 to i32
    %c0_i32_0 = arith.constant 0 : i32
    %2 = arith.cmpi ne, %1, %c0_i32_0 : i32
    scf.if %2 {
      %cst_93 = arith.constant 0.000000e+00 : f32
      %315 = vector.broadcast %cst_93 : f32 to vector<8x128xf32>
      %c0_94 = arith.constant 0 : index
      %c0_95 = arith.constant 0 : index
      %316 = vector.load %arg10[%c0_94, %c0_95] : memref<8x128xf32, #tpu.memory_space<vmem>>, vector<8x128xf32>
      tpu.vector_store %arg10[%c0_94, %c0_95], %315 {strides = array<i32>} : memref<8x128xf32, #tpu.memory_space<vmem>>, vector<8x128xf32>,
      %cst_96 = arith.constant 0.000000e+00 : f32
      %317 = vector.broadcast %cst_96 : f32 to vector<8x128xf32>
      %c0_97 = arith.constant 0 : index
      %c0_98 = arith.constant 0 : index
      %318 = vector.load %arg11[%c0_97, %c0_98] : memref<8x128xf32, #tpu.memory_space<vmem>>, vector<8x128xf32>
      tpu.vector_store %arg11[%c0_97, %c0_98], %317 {strides = array<i32>} : memref<8x128xf32, #tpu.memory_space<vmem>>, vector<8x128xf32>,
    } else {
    }
    %c0 = arith.constant 0 : index
    %c0_1 = arith.constant 0 : index
    %c0_2 = arith.constant 0 : index
    %3 = vector.load %arg2[%c0, %c0_1, %c0_2] : memref<8x8x16xbf16, #tpu.memory_space<vmem>>, vector<8x8x16xbf16>
    %4 = vector.shape_cast %3 : vector<8x8x16xbf16> to vector<64x16xbf16>
    %c0_3 = arith.constant 0 : index
    %c0_4 = arith.constant 0 : index
    %5 = vector.load %arg3[%c0_3, %c0_4] : memref<16x512xbf16, #tpu.memory_space<vmem>>, vector<16x512xbf16>
    %cst = arith.constant dense<0.000000e+00> : vector<64x512xf32>
    %6 = tpu.matmul %4, %5, %cst {dimension_numbers = #tpu.dot_dimension_numbers<[1], [0], [0], [1], [0, 0, 1, 1], [], []>} : vector<64x16xbf16>, vector<16x512xbf16>, vector<64x512xf32> -> vector<64x512xf32>
    %c0_5 = arith.constant 0 : index
    %c0_6 = arith.constant 0 : index
    %7 = vector.load %arg5[%c0_5, %c0_6] : memref<1x512xf32, #tpu.memory_space<vmem>>, vector<1x512xf32>
    %8 = vector.broadcast %7 : vector<1x512xf32> to vector<64x512xf32>
    %9 = arith.addf %6, %8 : vector<64x512xf32>
    %c0_7 = arith.constant 0 : index
    %c0_8 = arith.constant 0 : index
    %10 = vector.load %arg9[%c0_7, %c0_8] : memref<64x512xf32, #tpu.memory_space<vmem>>, vector<64x512xf32>
    tpu.vector_store %arg9[%c0_7, %c0_8], %9 {strides = array<i32>} : memref<64x512xf32, #tpu.memory_space<vmem>>, vector<64x512xf32>,
    %c8_i32 = arith.constant 8 : i32
    %11 = arith.muli %arg1, %c8_i32 : i32
    %c0_9 = arith.constant 0 : index
    %c0_10 = arith.constant 0 : index
    %12 = vector.load %arg10[%c0_9, %c0_10] : memref<8x128xf32, #tpu.memory_space<vmem>>, vector<8x128xf32>
    %c0_11 = arith.constant 0 : index
    %c0_12 = arith.constant 0 : index
    %13 = vector.load %arg11[%c0_11, %c0_12] : memref<8x128xf32, #tpu.memory_space<vmem>>, vector<8x128xf32>
    %c0_i32_13 = arith.constant 0 : i32
    %c8_i32_14 = arith.constant 8 : i32
    %14 = arith.muli %c0_i32_13, %c8_i32_14 : i32
    %15 = tpu.assume_multiple %14, 8 : i32
    %16 = arith.index_cast %15 : i32 to index
    %c0_15 = arith.constant 0 : index
    %17 = vector.load %arg9[%16, %c0_15] : memref<64x512xf32, #tpu.memory_space<vmem>>, vector<8x512xf32>
    %18 = arith.truncf %12 : vector<8x128xf32> to vector<8x128xbf16>
    %c0_16 = arith.constant 0 : index
    %c0_17 = arith.constant 0 : index
    %19 = vector.load %arg4[%c0_16, %c0_17] : memref<128x512xbf16, #tpu.memory_space<vmem>>, vector<128x512xbf16>
    %cst_18 = arith.constant dense<0.000000e+00> : vector<8x512xf32>
    %20 = tpu.matmul %18, %19, %cst_18 {dimension_numbers = #tpu.dot_dimension_numbers<[1], [0], [0], [1], [0, 0, 1, 1], [], []>} : vector<8x128xbf16>, vector<128x512xbf16>, vector<8x512xf32> -> vector<8x512xf32>
    %21 = arith.addf %17, %20 : vector<8x512xf32>
    %22 = vector.extract_strided_slice %21 {offsets = [0, 0], sizes = [8, 128], strides = [1, 1]} : vector<8x512xf32> to vector<8x128xf32>
    %23 = arith.negf %22 : vector<8x128xf32>
    %24 = math.exp %23 : vector<8x128xf32>
    %cst_19 = arith.constant 1.000000e+00 : f32
    %25 = vector.broadcast %cst_19 : f32 to vector<8x128xf32>
    %26 = arith.addf %25, %24 : vector<8x128xf32>
    %27 = arith.divf %25, %26 : vector<8x128xf32>
    %28 = vector.extract_strided_slice %21 {offsets = [0, 128], sizes = [8, 128], strides = [1, 1]} : vector<8x512xf32> to vector<8x128xf32>
    %29 = arith.negf %28 : vector<8x128xf32>
    %30 = math.exp %29 : vector<8x128xf32>
    %cst_20 = arith.constant 1.000000e+00 : f32
    %31 = vector.broadcast %cst_20 : f32 to vector<8x128xf32>
    %32 = arith.addf %31, %30 : vector<8x128xf32>
    %33 = arith.divf %31, %32 : vector<8x128xf32>
    %34 = vector.extract_strided_slice %21 {offsets = [0, 256], sizes = [8, 128], strides = [1, 1]} : vector<8x512xf32> to vector<8x128xf32>
    %35 = math.tanh %34 : vector<8x128xf32>
    %36 = vector.extract_strided_slice %21 {offsets = [0, 384], sizes = [8, 128], strides = [1, 1]} : vector<8x512xf32> to vector<8x128xf32>
    %37 = arith.negf %36 : vector<8x128xf32>
    %38 = math.exp %37 : vector<8x128xf32>
    %cst_21 = arith.constant 1.000000e+00 : f32
    %39 = vector.broadcast %cst_21 : f32 to vector<8x128xf32>
    %40 = arith.addf %39, %38 : vector<8x128xf32>
    %41 = arith.divf %39, %40 : vector<8x128xf32>
    %42 = arith.mulf %33, %13 : vector<8x128xf32>
    %43 = arith.mulf %27, %35 : vector<8x128xf32>
    %44 = arith.addf %42, %43 : vector<8x128xf32>
    %45 = math.tanh %44 : vector<8x128xf32>
    %46 = arith.mulf %41, %45 : vector<8x128xf32>
    %47 = arith.addi %11, %c0_i32_13 : i32
    %c8_i32_22 = arith.constant 8 : i32
    %48 = arith.cmpi slt, %47, %c8_i32_22 : i32
    %49 = arith.select %48, %46, %12 : vector<8x128xf32>
    %50 = arith.select %48, %44, %13 : vector<8x128xf32>
    %c1_i32 = arith.constant 1 : i32
    %c8_i32_23 = arith.constant 8 : i32
    %51 = arith.muli %c1_i32, %c8_i32_23 : i32
    %52 = tpu.assume_multiple %51, 8 : i32
    %53 = arith.index_cast %52 : i32 to index
    %c0_24 = arith.constant 0 : index
    %54 = vector.load %arg9[%53, %c0_24] : memref<64x512xf32, #tpu.memory_space<vmem>>, vector<8x512xf32>
    %55 = arith.truncf %49 : vector<8x128xf32> to vector<8x128xbf16>
    %c0_25 = arith.constant 0 : index
    %c0_26 = arith.constant 0 : index
    %56 = vector.load %arg4[%c0_25, %c0_26] : memref<128x512xbf16, #tpu.memory_space<vmem>>, vector<128x512xbf16>
    %cst_27 = arith.constant dense<0.000000e+00> : vector<8x512xf32>
    %57 = tpu.matmul %55, %56, %cst_27 {dimension_numbers = #tpu.dot_dimension_numbers<[1], [0], [0], [1], [0, 0, 1, 1], [], []>} : vector<8x128xbf16>, vector<128x512xbf16>, vector<8x512xf32> -> vector<8x512xf32>
    %58 = arith.addf %54, %57 : vector<8x512xf32>
    %59 = vector.extract_strided_slice %58 {offsets = [0, 0], sizes = [8, 128], strides = [1, 1]} : vector<8x512xf32> to vector<8x128xf32>
    %60 = arith.negf %59 : vector<8x128xf32>
    %61 = math.exp %60 : vector<8x128xf32>
    %cst_28 = arith.constant 1.000000e+00 : f32
    %62 = vector.broadcast %cst_28 : f32 to vector<8x128xf32>
    %63 = arith.addf %62, %61 : vector<8x128xf32>
    %64 = arith.divf %62, %63 : vector<8x128xf32>
    %65 = vector.extract_strided_slice %58 {offsets = [0, 128], sizes = [8, 128], strides = [1, 1]} : vector<8x512xf32> to vector<8x128xf32>
    %66 = arith.negf %65 : vector<8x128xf32>
    %67 = math.exp %66 : vector<8x128xf32>
    %cst_29 = arith.constant 1.000000e+00 : f32
    %68 = vector.broadcast %cst_29 : f32 to vector<8x128xf32>
    %69 = arith.addf %68, %67 : vector<8x128xf32>
    %70 = arith.divf %68, %69 : vector<8x128xf32>
    %71 = vector.extract_strided_slice %58 {offsets = [0, 256], sizes = [8, 128], strides = [1, 1]} : vector<8x512xf32> to vector<8x128xf32>
    %72 = math.tanh %71 : vector<8x128xf32>
    %73 = vector.extract_strided_slice %58 {offsets = [0, 384], sizes = [8, 128], strides = [1, 1]} : vector<8x512xf32> to vector<8x128xf32>
    %74 = arith.negf %73 : vector<8x128xf32>
    %75 = math.exp %74 : vector<8x128xf32>
    %cst_30 = arith.constant 1.000000e+00 : f32
    %76 = vector.broadcast %cst_30 : f32 to vector<8x128xf32>
    %77 = arith.addf %76, %75 : vector<8x128xf32>
    %78 = arith.divf %76, %77 : vector<8x128xf32>
    %79 = arith.mulf %70, %50 : vector<8x128xf32>
    %80 = arith.mulf %64, %72 : vector<8x128xf32>
    %81 = arith.addf %79, %80 : vector<8x128xf32>
    %82 = math.tanh %81 : vector<8x128xf32>
    %83 = arith.mulf %78, %82 : vector<8x128xf32>
    %84 = arith.addi %11, %c1_i32 : i32
    %c8_i32_31 = arith.constant 8 : i32
    %85 = arith.cmpi slt, %84, %c8_i32_31 : i32
    %86 = arith.select %85, %83, %49 : vector<8x128xf32>
    %87 = arith.select %85, %81, %50 : vector<8x128xf32>
    %c2_i32 = arith.constant 2 : i32
    %c8_i32_32 = arith.constant 8 : i32
    %88 = arith.muli %c2_i32, %c8_i32_32 : i32
    %89 = tpu.assume_multiple %88, 8 : i32
    %90 = arith.index_cast %89 : i32 to index
    %c0_33 = arith.constant 0 : index
    %91 = vector.load %arg9[%90, %c0_33] : memref<64x512xf32, #tpu.memory_space<vmem>>, vector<8x512xf32>
    %92 = arith.truncf %86 : vector<8x128xf32> to vector<8x128xbf16>
    %c0_34 = arith.constant 0 : index
    %c0_35 = arith.constant 0 : index
    %93 = vector.load %arg4[%c0_34, %c0_35] : memref<128x512xbf16, #tpu.memory_space<vmem>>, vector<128x512xbf16>
    %cst_36 = arith.constant dense<0.000000e+00> : vector<8x512xf32>
    %94 = tpu.matmul %92, %93, %cst_36 {dimension_numbers = #tpu.dot_dimension_numbers<[1], [0], [0], [1], [0, 0, 1, 1], [], []>} : vector<8x128xbf16>, vector<128x512xbf16>, vector<8x512xf32> -> vector<8x512xf32>
    %95 = arith.addf %91, %94 : vector<8x512xf32>
    %96 = vector.extract_strided_slice %95 {offsets = [0, 0], sizes = [8, 128], strides = [1, 1]} : vector<8x512xf32> to vector<8x128xf32>
    %97 = arith.negf %96 : vector<8x128xf32>
    %98 = math.exp %97 : vector<8x128xf32>
    %cst_37 = arith.constant 1.000000e+00 : f32
    %99 = vector.broadcast %cst_37 : f32 to vector<8x128xf32>
    %100 = arith.addf %99, %98 : vector<8x128xf32>
    %101 = arith.divf %99, %100 : vector<8x128xf32>
    %102 = vector.extract_strided_slice %95 {offsets = [0, 128], sizes = [8, 128], strides = [1, 1]} : vector<8x512xf32> to vector<8x128xf32>
    %103 = arith.negf %102 : vector<8x128xf32>
    %104 = math.exp %103 : vector<8x128xf32>
    %cst_38 = arith.constant 1.000000e+00 : f32
    %105 = vector.broadcast %cst_38 : f32 to vector<8x128xf32>
    %106 = arith.addf %105, %104 : vector<8x128xf32>
    %107 = arith.divf %105, %106 : vector<8x128xf32>
    %108 = vector.extract_strided_slice %95 {offsets = [0, 256], sizes = [8, 128], strides = [1, 1]} : vector<8x512xf32> to vector<8x128xf32>
    %109 = math.tanh %108 : vector<8x128xf32>
    %110 = vector.extract_strided_slice %95 {offsets = [0, 384], sizes = [8, 128], strides = [1, 1]} : vector<8x512xf32> to vector<8x128xf32>
    %111 = arith.negf %110 : vector<8x128xf32>
    %112 = math.exp %111 : vector<8x128xf32>
    %cst_39 = arith.constant 1.000000e+00 : f32
    %113 = vector.broadcast %cst_39 : f32 to vector<8x128xf32>
    %114 = arith.addf %113, %112 : vector<8x128xf32>
    %115 = arith.divf %113, %114 : vector<8x128xf32>
    %116 = arith.mulf %107, %87 : vector<8x128xf32>
    %117 = arith.mulf %101, %109 : vector<8x128xf32>
    %118 = arith.addf %116, %117 : vector<8x128xf32>
    %119 = math.tanh %118 : vector<8x128xf32>
    %120 = arith.mulf %115, %119 : vector<8x128xf32>
    %121 = arith.addi %11, %c2_i32 : i32
    %c8_i32_40 = arith.constant 8 : i32
    %122 = arith.cmpi slt, %121, %c8_i32_40 : i32
    %123 = arith.select %122, %120, %86 : vector<8x128xf32>
    %124 = arith.select %122, %118, %87 : vector<8x128xf32>
    %c3_i32 = arith.constant 3 : i32
    %c8_i32_41 = arith.constant 8 : i32
    %125 = arith.muli %c3_i32, %c8_i32_41 : i32
    %126 = tpu.assume_multiple %125, 8 : i32
    %127 = arith.index_cast %126 : i32 to index
    %c0_42 = arith.constant 0 : index
    %128 = vector.load %arg9[%127, %c0_42] : memref<64x512xf32, #tpu.memory_space<vmem>>, vector<8x512xf32>
    %129 = arith.truncf %123 : vector<8x128xf32> to vector<8x128xbf16>
    %c0_43 = arith.constant 0 : index
    %c0_44 = arith.constant 0 : index
    %130 = vector.load %arg4[%c0_43, %c0_44] : memref<128x512xbf16, #tpu.memory_space<vmem>>, vector<128x512xbf16>
    %cst_45 = arith.constant dense<0.000000e+00> : vector<8x512xf32>
    %131 = tpu.matmul %129, %130, %cst_45 {dimension_numbers = #tpu.dot_dimension_numbers<[1], [0], [0], [1], [0, 0, 1, 1], [], []>} : vector<8x128xbf16>, vector<128x512xbf16>, vector<8x512xf32> -> vector<8x512xf32>
    %132 = arith.addf %128, %131 : vector<8x512xf32>
    %133 = vector.extract_strided_slice %132 {offsets = [0, 0], sizes = [8, 128], strides = [1, 1]} : vector<8x512xf32> to vector<8x128xf32>
    %134 = arith.negf %133 : vector<8x128xf32>
    %135 = math.exp %134 : vector<8x128xf32>
    %cst_46 = arith.constant 1.000000e+00 : f32
    %136 = vector.broadcast %cst_46 : f32 to vector<8x128xf32>
    %137 = arith.addf %136, %135 : vector<8x128xf32>
    %138 = arith.divf %136, %137 : vector<8x128xf32>
    %139 = vector.extract_strided_slice %132 {offsets = [0, 128], sizes = [8, 128], strides = [1, 1]} : vector<8x512xf32> to vector<8x128xf32>
    %140 = arith.negf %139 : vector<8x128xf32>
    %141 = math.exp %140 : vector<8x128xf32>
    %cst_47 = arith.constant 1.000000e+00 : f32
    %142 = vector.broadcast %cst_47 : f32 to vector<8x128xf32>
    %143 = arith.addf %142, %141 : vector<8x128xf32>
    %144 = arith.divf %142, %143 : vector<8x128xf32>
    %145 = vector.extract_strided_slice %132 {offsets = [0, 256], sizes = [8, 128], strides = [1, 1]} : vector<8x512xf32> to vector<8x128xf32>
    %146 = math.tanh %145 : vector<8x128xf32>
    %147 = vector.extract_strided_slice %132 {offsets = [0, 384], sizes = [8, 128], strides = [1, 1]} : vector<8x512xf32> to vector<8x128xf32>
    %148 = arith.negf %147 : vector<8x128xf32>
    %149 = math.exp %148 : vector<8x128xf32>
    %cst_48 = arith.constant 1.000000e+00 : f32
    %150 = vector.broadcast %cst_48 : f32 to vector<8x128xf32>
    %151 = arith.addf %150, %149 : vector<8x128xf32>
    %152 = arith.divf %150, %151 : vector<8x128xf32>
    %153 = arith.mulf %144, %124 : vector<8x128xf32>
    %154 = arith.mulf %138, %146 : vector<8x128xf32>
    %155 = arith.addf %153, %154 : vector<8x128xf32>
    %156 = math.tanh %155 : vector<8x128xf32>
    %157 = arith.mulf %152, %156 : vector<8x128xf32>
    %158 = arith.addi %11, %c3_i32 : i32
    %c8_i32_49 = arith.constant 8 : i32
    %159 = arith.cmpi slt, %158, %c8_i32_49 : i32
    %160 = arith.select %159, %157, %123 : vector<8x128xf32>
    %161 = arith.select %159, %155, %124 : vector<8x128xf32>
    %c4_i32 = arith.constant 4 : i32
    %c8_i32_50 = arith.constant 8 : i32
    %162 = arith.muli %c4_i32, %c8_i32_50 : i32
    %163 = tpu.assume_multiple %162, 8 : i32
    %164 = arith.index_cast %163 : i32 to index
    %c0_51 = arith.constant 0 : index
    %165 = vector.load %arg9[%164, %c0_51] : memref<64x512xf32, #tpu.memory_space<vmem>>, vector<8x512xf32>
    %166 = arith.truncf %160 : vector<8x128xf32> to vector<8x128xbf16>
    %c0_52 = arith.constant 0 : index
    %c0_53 = arith.constant 0 : index
    %167 = vector.load %arg4[%c0_52, %c0_53] : memref<128x512xbf16, #tpu.memory_space<vmem>>, vector<128x512xbf16>
    %cst_54 = arith.constant dense<0.000000e+00> : vector<8x512xf32>
    %168 = tpu.matmul %166, %167, %cst_54 {dimension_numbers = #tpu.dot_dimension_numbers<[1], [0], [0], [1], [0, 0, 1, 1], [], []>} : vector<8x128xbf16>, vector<128x512xbf16>, vector<8x512xf32> -> vector<8x512xf32>
    %169 = arith.addf %165, %168 : vector<8x512xf32>
    %170 = vector.extract_strided_slice %169 {offsets = [0, 0], sizes = [8, 128], strides = [1, 1]} : vector<8x512xf32> to vector<8x128xf32>
    %171 = arith.negf %170 : vector<8x128xf32>
    %172 = math.exp %171 : vector<8x128xf32>
    %cst_55 = arith.constant 1.000000e+00 : f32
    %173 = vector.broadcast %cst_55 : f32 to vector<8x128xf32>
    %174 = arith.addf %173, %172 : vector<8x128xf32>
    %175 = arith.divf %173, %174 : vector<8x128xf32>
    %176 = vector.extract_strided_slice %169 {offsets = [0, 128], sizes = [8, 128], strides = [1, 1]} : vector<8x512xf32> to vector<8x128xf32>
    %177 = arith.negf %176 : vector<8x128xf32>
    %178 = math.exp %177 : vector<8x128xf32>
    %cst_56 = arith.constant 1.000000e+00 : f32
    %179 = vector.broadcast %cst_56 : f32 to vector<8x128xf32>
    %180 = arith.addf %179, %178 : vector<8x128xf32>
    %181 = arith.divf %179, %180 : vector<8x128xf32>
    %182 = vector.extract_strided_slice %169 {offsets = [0, 256], sizes = [8, 128], strides = [1, 1]} : vector<8x512xf32> to vector<8x128xf32>
    %183 = math.tanh %182 : vector<8x128xf32>
    %184 = vector.extract_strided_slice %169 {offsets = [0, 384], sizes = [8, 128], strides = [1, 1]} : vector<8x512xf32> to vector<8x128xf32>
    %185 = arith.negf %184 : vector<8x128xf32>
    %186 = math.exp %185 : vector<8x128xf32>
    %cst_57 = arith.constant 1.000000e+00 : f32
    %187 = vector.broadcast %cst_57 : f32 to vector<8x128xf32>
    %188 = arith.addf %187, %186 : vector<8x128xf32>
    %189 = arith.divf %187, %188 : vector<8x128xf32>
    %190 = arith.mulf %181, %161 : vector<8x128xf32>
    %191 = arith.mulf %175, %183 : vector<8x128xf32>
    %192 = arith.addf %190, %191 : vector<8x128xf32>
    %193 = math.tanh %192 : vector<8x128xf32>
    %194 = arith.mulf %189, %193 : vector<8x128xf32>
    %195 = arith.addi %11, %c4_i32 : i32
    %c8_i32_58 = arith.constant 8 : i32
    %196 = arith.cmpi slt, %195, %c8_i32_58 : i32
    %197 = arith.select %196, %194, %160 : vector<8x128xf32>
    %198 = arith.select %196, %192, %161 : vector<8x128xf32>
    %c5_i32 = arith.constant 5 : i32
    %c8_i32_59 = arith.constant 8 : i32
    %199 = arith.muli %c5_i32, %c8_i32_59 : i32
    %200 = tpu.assume_multiple %199, 8 : i32
    %201 = arith.index_cast %200 : i32 to index
    %c0_60 = arith.constant 0 : index
    %202 = vector.load %arg9[%201, %c0_60] : memref<64x512xf32, #tpu.memory_space<vmem>>, vector<8x512xf32>
    %203 = arith.truncf %197 : vector<8x128xf32> to vector<8x128xbf16>
    %c0_61 = arith.constant 0 : index
    %c0_62 = arith.constant 0 : index
    %204 = vector.load %arg4[%c0_61, %c0_62] : memref<128x512xbf16, #tpu.memory_space<vmem>>, vector<128x512xbf16>
    %cst_63 = arith.constant dense<0.000000e+00> : vector<8x512xf32>
    %205 = tpu.matmul %203, %204, %cst_63 {dimension_numbers = #tpu.dot_dimension_numbers<[1], [0], [0], [1], [0, 0, 1, 1], [], []>} : vector<8x128xbf16>, vector<128x512xbf16>, vector<8x512xf32> -> vector<8x512xf32>
    %206 = arith.addf %202, %205 : vector<8x512xf32>
    %207 = vector.extract_strided_slice %206 {offsets = [0, 0], sizes = [8, 128], strides = [1, 1]} : vector<8x512xf32> to vector<8x128xf32>
    %208 = arith.negf %207 : vector<8x128xf32>
    %209 = math.exp %208 : vector<8x128xf32>
    %cst_64 = arith.constant 1.000000e+00 : f32
    %210 = vector.broadcast %cst_64 : f32 to vector<8x128xf32>
    %211 = arith.addf %210, %209 : vector<8x128xf32>
    %212 = arith.divf %210, %211 : vector<8x128xf32>
    %213 = vector.extract_strided_slice %206 {offsets = [0, 128], sizes = [8, 128], strides = [1, 1]} : vector<8x512xf32> to vector<8x128xf32>
    %214 = arith.negf %213 : vector<8x128xf32>
    %215 = math.exp %214 : vector<8x128xf32>
    %cst_65 = arith.constant 1.000000e+00 : f32
    %216 = vector.broadcast %cst_65 : f32 to vector<8x128xf32>
    %217 = arith.addf %216, %215 : vector<8x128xf32>
    %218 = arith.divf %216, %217 : vector<8x128xf32>
    %219 = vector.extract_strided_slice %206 {offsets = [0, 256], sizes = [8, 128], strides = [1, 1]} : vector<8x512xf32> to vector<8x128xf32>
    %220 = math.tanh %219 : vector<8x128xf32>
    %221 = vector.extract_strided_slice %206 {offsets = [0, 384], sizes = [8, 128], strides = [1, 1]} : vector<8x512xf32> to vector<8x128xf32>
    %222 = arith.negf %221 : vector<8x128xf32>
    %223 = math.exp %222 : vector<8x128xf32>
    %cst_66 = arith.constant 1.000000e+00 : f32
    %224 = vector.broadcast %cst_66 : f32 to vector<8x128xf32>
    %225 = arith.addf %224, %223 : vector<8x128xf32>
    %226 = arith.divf %224, %225 : vector<8x128xf32>
    %227 = arith.mulf %218, %198 : vector<8x128xf32>
    %228 = arith.mulf %212, %220 : vector<8x128xf32>
    %229 = arith.addf %227, %228 : vector<8x128xf32>
    %230 = math.tanh %229 : vector<8x128xf32>
    %231 = arith.mulf %226, %230 : vector<8x128xf32>
    %232 = arith.addi %11, %c5_i32 : i32
    %c8_i32_67 = arith.constant 8 : i32
    %233 = arith.cmpi slt, %232, %c8_i32_67 : i32
    %234 = arith.select %233, %231, %197 : vector<8x128xf32>
    %235 = arith.select %233, %229, %198 : vector<8x128xf32>
    %c6_i32 = arith.constant 6 : i32
    %c8_i32_68 = arith.constant 8 : i32
    %236 = arith.muli %c6_i32, %c8_i32_68 : i32
    %237 = tpu.assume_multiple %236, 8 : i32
    %238 = arith.index_cast %237 : i32 to index
    %c0_69 = arith.constant 0 : index
    %239 = vector.load %arg9[%238, %c0_69] : memref<64x512xf32, #tpu.memory_space<vmem>>, vector<8x512xf32>
    %240 = arith.truncf %234 : vector<8x128xf32> to vector<8x128xbf16>
    %c0_70 = arith.constant 0 : index
    %c0_71 = arith.constant 0 : index
    %241 = vector.load %arg4[%c0_70, %c0_71] : memref<128x512xbf16, #tpu.memory_space<vmem>>, vector<128x512xbf16>
    %cst_72 = arith.constant dense<0.000000e+00> : vector<8x512xf32>
    %242 = tpu.matmul %240, %241, %cst_72 {dimension_numbers = #tpu.dot_dimension_numbers<[1], [0], [0], [1], [0, 0, 1, 1], [], []>} : vector<8x128xbf16>, vector<128x512xbf16>, vector<8x512xf32> -> vector<8x512xf32>
    %243 = arith.addf %239, %242 : vector<8x512xf32>
    %244 = vector.extract_strided_slice %243 {offsets = [0, 0], sizes = [8, 128], strides = [1, 1]} : vector<8x512xf32> to vector<8x128xf32>
    %245 = arith.negf %244 : vector<8x128xf32>
    %246 = math.exp %245 : vector<8x128xf32>
    %cst_73 = arith.constant 1.000000e+00 : f32
    %247 = vector.broadcast %cst_73 : f32 to vector<8x128xf32>
    %248 = arith.addf %247, %246 : vector<8x128xf32>
    %249 = arith.divf %247, %248 : vector<8x128xf32>
    %250 = vector.extract_strided_slice %243 {offsets = [0, 128], sizes = [8, 128], strides = [1, 1]} : vector<8x512xf32> to vector<8x128xf32>
    %251 = arith.negf %250 : vector<8x128xf32>
    %252 = math.exp %251 : vector<8x128xf32>
    %cst_74 = arith.constant 1.000000e+00 : f32
    %253 = vector.broadcast %cst_74 : f32 to vector<8x128xf32>
    %254 = arith.addf %253, %252 : vector<8x128xf32>
    %255 = arith.divf %253, %254 : vector<8x128xf32>
    %256 = vector.extract_strided_slice %243 {offsets = [0, 256], sizes = [8, 128], strides = [1, 1]} : vector<8x512xf32> to vector<8x128xf32>
    %257 = math.tanh %256 : vector<8x128xf32>
    %258 = vector.extract_strided_slice %243 {offsets = [0, 384], sizes = [8, 128], strides = [1, 1]} : vector<8x512xf32> to vector<8x128xf32>
    %259 = arith.negf %258 : vector<8x128xf32>
    %260 = math.exp %259 : vector<8x128xf32>
    %cst_75 = arith.constant 1.000000e+00 : f32
    %261 = vector.broadcast %cst_75 : f32 to vector<8x128xf32>
    %262 = arith.addf %261, %260 : vector<8x128xf32>
    %263 = arith.divf %261, %262 : vector<8x128xf32>
    %264 = arith.mulf %255, %235 : vector<8x128xf32>
    %265 = arith.mulf %249, %257 : vector<8x128xf32>
    %266 = arith.addf %264, %265 : vector<8x128xf32>
    %267 = math.tanh %266 : vector<8x128xf32>
    %268 = arith.mulf %263, %267 : vector<8x128xf32>
    %269 = arith.addi %11, %c6_i32 : i32
    %c8_i32_76 = arith.constant 8 : i32
    %270 = arith.cmpi slt, %269, %c8_i32_76 : i32
    %271 = arith.select %270, %268, %234 : vector<8x128xf32>
    %272 = arith.select %270, %266, %235 : vector<8x128xf32>
    %c7_i32 = arith.constant 7 : i32
    %c8_i32_77 = arith.constant 8 : i32
    %273 = arith.muli %c7_i32, %c8_i32_77 : i32
    %274 = tpu.assume_multiple %273, 8 : i32
    %275 = arith.index_cast %274 : i32 to index
    %c0_78 = arith.constant 0 : index
    %276 = vector.load %arg9[%275, %c0_78] : memref<64x512xf32, #tpu.memory_space<vmem>>, vector<8x512xf32>
    %277 = arith.truncf %271 : vector<8x128xf32> to vector<8x128xbf16>
    %c0_79 = arith.constant 0 : index
    %c0_80 = arith.constant 0 : index
    %278 = vector.load %arg4[%c0_79, %c0_80] : memref<128x512xbf16, #tpu.memory_space<vmem>>, vector<128x512xbf16>
    %cst_81 = arith.constant dense<0.000000e+00> : vector<8x512xf32>
    %279 = tpu.matmul %277, %278, %cst_81 {dimension_numbers = #tpu.dot_dimension_numbers<[1], [0], [0], [1], [0, 0, 1, 1], [], []>} : vector<8x128xbf16>, vector<128x512xbf16>, vector<8x512xf32> -> vector<8x512xf32>
    %280 = arith.addf %276, %279 : vector<8x512xf32>
    %281 = vector.extract_strided_slice %280 {offsets = [0, 0], sizes = [8, 128], strides = [1, 1]} : vector<8x512xf32> to vector<8x128xf32>
    %282 = arith.negf %281 : vector<8x128xf32>
    %283 = math.exp %282 : vector<8x128xf32>
    %cst_82 = arith.constant 1.000000e+00 : f32
    %284 = vector.broadcast %cst_82 : f32 to vector<8x128xf32>
    %285 = arith.addf %284, %283 : vector<8x128xf32>
    %286 = arith.divf %284, %285 : vector<8x128xf32>
    %287 = vector.extract_strided_slice %280 {offsets = [0, 128], sizes = [8, 128], strides = [1, 1]} : vector<8x512xf32> to vector<8x128xf32>
    %288 = arith.negf %287 : vector<8x128xf32>
    %289 = math.exp %288 : vector<8x128xf32>
    %cst_83 = arith.constant 1.000000e+00 : f32
    %290 = vector.broadcast %cst_83 : f32 to vector<8x128xf32>
    %291 = arith.addf %290, %289 : vector<8x128xf32>
    %292 = arith.divf %290, %291 : vector<8x128xf32>
    %293 = vector.extract_strided_slice %280 {offsets = [0, 256], sizes = [8, 128], strides = [1, 1]} : vector<8x512xf32> to vector<8x128xf32>
    %294 = math.tanh %293 : vector<8x128xf32>
    %295 = vector.extract_strided_slice %280 {offsets = [0, 384], sizes = [8, 128], strides = [1, 1]} : vector<8x512xf32> to vector<8x128xf32>
    %296 = arith.negf %295 : vector<8x128xf32>
    %297 = math.exp %296 : vector<8x128xf32>
    %cst_84 = arith.constant 1.000000e+00 : f32
    %298 = vector.broadcast %cst_84 : f32 to vector<8x128xf32>
    %299 = arith.addf %298, %297 : vector<8x128xf32>
    %300 = arith.divf %298, %299 : vector<8x128xf32>
    %301 = arith.mulf %292, %272 : vector<8x128xf32>
    %302 = arith.mulf %286, %294 : vector<8x128xf32>
    %303 = arith.addf %301, %302 : vector<8x128xf32>
    %304 = math.tanh %303 : vector<8x128xf32>
    %305 = arith.mulf %300, %304 : vector<8x128xf32>
    %306 = arith.addi %11, %c7_i32 : i32
    %c8_i32_85 = arith.constant 8 : i32
    %307 = arith.cmpi slt, %306, %c8_i32_85 : i32
    %308 = arith.select %307, %305, %271 : vector<8x128xf32>
    %309 = arith.select %307, %303, %272 : vector<8x128xf32>
    %c8_i32_86 = arith.constant 8 : i32
    %c0_87 = arith.constant 0 : index
    %c0_88 = arith.constant 0 : index
    %310 = vector.load %arg10[%c0_87, %c0_88] : memref<8x128xf32, #tpu.memory_space<vmem>>, vector<8x128xf32>
    tpu.vector_store %arg10[%c0_87, %c0_88], %308 {strides = array<i32>} : memref<8x128xf32, #tpu.memory_space<vmem>>, vector<8x128xf32>,
    %c0_89 = arith.constant 0 : index
    %c0_90 = arith.constant 0 : index
    %311 = vector.load %arg11[%c0_89, %c0_90] : memref<8x128xf32, #tpu.memory_space<vmem>>, vector<8x128xf32>
    tpu.vector_store %arg11[%c0_89, %c0_90], %309 {strides = array<i32>} : memref<8x128xf32, #tpu.memory_space<vmem>>, vector<8x128xf32>,
    %c0_i32_91 = arith.constant 0 : i32
    %312 = arith.cmpi eq, %arg1, %c0_i32_91 : i32
    %313 = arith.extui %312 : i1 to i32
    %c0_i32_92 = arith.constant 0 : i32
    %314 = arith.cmpi ne, %313, %c0_i32_92 : i32
    scf.if %314 {
      %c0_93 = arith.constant 0 : index
      %c0_94 = arith.constant 0 : index
      %315 = vector.load %arg6[%c0_93, %c0_94] : memref<1x128xf32, #tpu.memory_space<vmem>>, vector<1x128xf32>
      %316 = vector.broadcast %315 : vector<1x128xf32> to vector<8x128xf32>
      %317 = arith.mulf %308, %316 : vector<8x128xf32>
      %cst_95 = arith.constant dense<0.000000e+00> : vector<8xf32>
      %318 = vector.multi_reduction <add>, %317, %cst_95 [1] : vector<8x128xf32> to vector<8xf32>
      %319 = vector.shape_cast %318 : vector<8xf32> to vector<8x1xf32>
      %c0_96 = arith.constant 0 : index
      %c0_97 = arith.constant 0 : index
      %320 = vector.load %arg7[%c0_96, %c0_97] : memref<1x1xf32, #tpu.memory_space<vmem>>, vector<1x1xf32>
      %321 = vector.broadcast %320 : vector<1x1xf32> to vector<8x1xf32>
      %322 = arith.addf %319, %321 : vector<8x1xf32>
      %323 = arith.negf %322 : vector<8x1xf32>
      %324 = math.exp %323 : vector<8x1xf32>
      %cst_98 = arith.constant 1.000000e+00 : f32
      %325 = vector.broadcast %cst_98 : f32 to vector<8x1xf32>
      %326 = arith.addf %325, %324 : vector<8x1xf32>
      %327 = arith.divf %325, %326 : vector<8x1xf32>
      %c0_99 = arith.constant 0 : index
      %c0_100 = arith.constant 0 : index
      %328 = vector.load %arg8[%c0_99, %c0_100] : memref<8x1xf32, #tpu.memory_space<vmem>>, vector<8x1xf32>
      tpu.vector_store %arg8[%c0_99, %c0_100], %327 {strides = array<i32>} : memref<8x1xf32, #tpu.memory_space<vmem>>, vector<8x1xf32>,
    } else {
    }
    return
  }
  func.func @transform_0(%arg0: i32, %arg1: i32) -> (i32, i32, i32) {
    %c0_i32 = arith.constant 0 : i32
    %c0_i32_0 = arith.constant 0 : i32
    return %arg1, %arg0, %c0_i32 : i32, i32, i32
  }
  func.func @transform_1(%arg0: i32, %arg1: i32) -> (i32, i32) {
    %c0_i32 = arith.constant 0 : i32
    %c0_i32_0 = arith.constant 0 : i32
    %c0_i32_1 = arith.constant 0 : i32
    return %c0_i32, %c0_i32_0 : i32, i32
  }
  func.func @transform_2(%arg0: i32, %arg1: i32) -> (i32, i32) {
    %c0_i32 = arith.constant 0 : i32
    %c0_i32_0 = arith.constant 0 : i32
    %c0_i32_1 = arith.constant 0 : i32
    return %c0_i32, %c0_i32_0 : i32, i32
  }
  func.func @transform_3(%arg0: i32, %arg1: i32) -> (i32, i32) {
    %c0_i32 = arith.constant 0 : i32
    %c0_i32_0 = arith.constant 0 : i32
    %c0_i32_1 = arith.constant 0 : i32
    return %c0_i32, %c0_i32_0 : i32, i32
  }
  func.func @transform_4(%arg0: i32, %arg1: i32) -> (i32, i32) {
    %c0_i32 = arith.constant 0 : i32
    %c0_i32_0 = arith.constant 0 : i32
    %c0_i32_1 = arith.constant 0 : i32
    return %c0_i32, %c0_i32_0 : i32, i32
  }
  func.func @transform_5(%arg0: i32, %arg1: i32) -> (i32, i32) {
    %c0_i32 = arith.constant 0 : i32
    %c0_i32_0 = arith.constant 0 : i32
    %c0_i32_1 = arith.constant 0 : i32
    return %c0_i32, %c0_i32_0 : i32, i32
  }
  func.func @transform_6(%arg0: i32, %arg1: i32) -> (i32, i32) {
    %c0_i32 = arith.constant 0 : i32
    %c0_i32_0 = arith.constant 0 : i32
    return %arg0, %c0_i32 : i32, i32
  }
}

</mosaic_0001>

<bundles_post_ra>
// kernel: tpu_custom_call.1
= control target key start
LH: loop header
LB: loop body
LE: loop exit
PB: predicated region body
PF: predicated region fallthrough
CT: control target
= control target key end

     0   :  { %s2543_s0 = inlined_call_operand.hbm [shape: bf16[8,8,16], index: 0, kind: input, shape index: {}]   ;;  %s2544_s1 = inlined_call_operand.hbm [shape: bf16[16,512], index: 1, kind: input, shape index: {}]   ;;  %s2545_s2 = inlined_call_operand.hbm [shape: bf16[128,512], index: 2, kind: input, shape index: {}]   ;;  %s2546_s3 = inlined_call_operand.vmem [shape: f32[1,512], index: 3, kind: input, shape index: {}]   ;;  %s2547_s4 = inlined_call_operand.vmem [shape: f32[1,128], index: 4, kind: input, shape index: {}]   ;;  %s2548_s5 = inlined_call_operand.<no memory space> [shape: f32[1,1], index: 5, kind: input, shape index: {}]   ;;  %s2549_s6 = inlined_call_operand.vmem [shape: f32[8,1], index: 6, kind: output, shape index: {}]  }
   0x1   :  { %v11_v0 = vstv %s2548_s5 }
   0x2   :  { %12 = vst [vmem:[#allocation5] sm:$0x1] %v11_v0 }
   0x3   :  { %13 = vsyncpa [#allocation7], 0 }
   0x4   :  { %14 = vsyncpa [#allocation9], 0  ;;  %s1946_s23 = smov [#allocation8]  }
   0x5   :  { %s32_s24 = sshll.u32 %s1946_s23, 4  ;;  %s33_s24 = int_to_ptr.vmem [resolvable:$true] %s32_s24 }
   0x6   :  { %s1890_s25 = scalar_lea.vmem %s33_s24, 512  ;;  %p1895_p1 = scmp.lt.s32.totalorder %s33_s24, %s33_s24 }
   0x7   :  { %p1891_p0 = scmp.ne.s32.totalorder %s33_s24, %s1890_s25  ;;  %p1896_p2 = scmp.lt.s32.totalorder %s1890_s25, %s1890_s25 }
   0x9   :  { %p1897_p3 = por %p1896_p2, %p1895_p1 }
   0xb   :  { %p1898_p4 = pnand %p1897_p3, %p1891_p0 }
   0xd   :  { %1901 = shalt.err (!%p1898_p4)
}
   0xe   :  { %s1947_s26 = smov 256   ;;  %s1948_s27 = smov 16  }
   0xf   :  { %38 = dma.hbm_to_vmem [thread:$0]  %s2544_s1, 512, %s33_s24, [#allocation9], %s1947_s26, %s1947_s26, %s1948_s27  }
  0x10   :  { %s1949_s5 = smov [#allocation6]  }
  0x11   :  { %s20_s30 = sshll.u32 %s1949_s5, 4  ;;  %s21_s30 = int_to_ptr.vmem [resolvable:$true] %s20_s30 }
  0x12   :  { %s1910_s7 = scalar_lea.vmem %s21_s30, 512  ;;  %p1915_p6 = scmp.lt.s32.totalorder %s21_s30, %s21_s30 }
  0x13   :  { %p1911_p5 = scmp.ne.s32.totalorder %s21_s30, %s1910_s7  ;;  %p1916_p7 = scmp.lt.s32.totalorder %s1910_s7, %s1910_s7 }
  0x15   :  { %p1917_p8 = por %p1916_p7, %p1915_p6 }
  0x17   :  { %p1918_p9 = pnand %p1917_p8, %p1911_p5 }
  0x19   :  { %1921 = shalt.err (!%p1918_p9)
}
  0x1a   :  { %s1950_s8 = smov 64   ;;  %s1951_s9 = smov 4  }
  0x1b   :  { %26 = dma.hbm_to_vmem [thread:$0]  %s2543_s0, 512, %s21_s30, [#allocation7], %s1950_s8, %s1950_s8, %s1951_s9  }
  0x1c   :  { %s1952_s12 = smov [#allocation10]  }
  0x1d   :  { %s44_s13 = sshll.u32 %s1952_s12, 4  ;;  %s45_s13 = int_to_ptr.vmem [resolvable:$true] %s44_s13 }
  0x1e   :  { %s1930_s1 = scalar_lea.vmem %s45_s13, 4096  ;;  %p1935_p11 = scmp.lt.s32.totalorder %s45_s13, %s45_s13 }
  0x1f   :  { %p1931_p10 = scmp.ne.s32.totalorder %s45_s13, %s1930_s1  ;;  %p1936_p12 = scmp.lt.s32.totalorder %s1930_s1, %s1930_s1 }
  0x21   :  { %p1937_p13 = por %p1936_p12, %p1935_p11 }
  0x23   :  { %p1938_p0 = pnand %p1937_p13, %p1931_p10 }
  0x25   :  { %1941 = shalt.err (!%p1938_p0)
}
  0x26   :  { %50 = dma.hbm_to_vmem [thread:$0]  %s2545_s2, 4096, %s45_s13, [#allocation9], %s1947_s26, %s1947_s26, %s1948_s27  }
  0x27   :  { %1942 = dma.done.wait [#allocation7], 512  }
  0x28   :  { %1943 = vsyncadd [#allocation7], 4294966784 }
  0x29   :  { %1944 = dma.done.wait [#allocation9], 4608  }
  0x2a   :  { %1945 = vsyncadd [#allocation9], 4294962688  ;;  %v2550_v1 = vmov 0   ;;  %v1660_v2 = vld [vmem:[#allocation8 + $0x4] ss:$16 sps:$4 sm:$0xff]   ;;  %vm147_vm0 = vcmask 130048   ;;  %v87_v43 = vlaneseq }
  0x2b   :  { %192 = vmatprep.mubr.bf16.mxu0 %v2550_v1  ;;  %265 = vmatprep.mubr.bf16.mxu1 %v2550_v1  ;;  %v1662_v3 = vld [vmem:[#allocation8 + $0xc] ss:$16 sps:$4 sm:$0xff]   ;;  %v1664_v4 = vld [vmem:[#allocation8] ss:$16 sps:$4 sm:$0xff]   ;;  %v1665_v5 = vld [vmem:[#allocation8 + $0x8] ss:$16 sps:$4 sm:$0xff]  }
  0x2c   :  { %174 = vmatprep.subr.bf16.mxu0 %v1660_v2  ;;  %247 = vmatprep.subr.bf16.mxu1 %v1662_v3  ;;  %v1666_v6 = vld [vmem:[#allocation6] sm:$0xff]   ;;  %v2006_v8 = vld [vmem:[#allocation10 + $0xec] ss:$16 sps:$4 sm:$0xff]   ;;  %v2011_v10 = vld [vmem:[#allocation10 + $0xe8] ss:$16 sps:$4 sm:$0xff]   ;;  %v1954_v42 = vmov 0.0|0.0  }
  0x2d   :  { %175 = vmatpush1.bf16.msra.mxu0 %v1664_v4  ;;  %248 = vmatpush1.bf16.msra.mxu1 %v1665_v5  ;;  %v2004_v7 = vld [vmem:[#allocation10 + $0xe4] ss:$16 sps:$4 sm:$0xff]   ;;  %v2008_v9 = vld [vmem:[#allocation10 + $0xe0] ss:$16 sps:$4 sm:$0xff]   ;;  %v2019_v12 = vld [vmem:[#allocation10 + $0xcc] ss:$16 sps:$4 sm:$0xff]  }
  0x2e   :  { %541 = vmatprep.subr.bf16.mxu0 %v2004_v7  ;;  %v2015_v11 = vld [vmem:[#allocation10 + $0xc4] ss:$16 sps:$4 sm:$0xff]   ;;  %582 = vmatprep.subr.bf16.mxu1 %v2006_v8  ;;  %v2021_v13 = vld [vmem:[#allocation10 + $0xc0] ss:$16 sps:$4 sm:$0xff]   ;;  %v2023_v14 = vld [vmem:[#allocation10 + $0xc8] ss:$16 sps:$4 sm:$0xff]  }
  0x2f   :  { %v1679_v15 = vld [vmem:[#allocation6 + $0x8] sm:$0xff]   ;;  %v2029_v16 = vld [vmem:[#allocation10 + $0xa4] ss:$16 sps:$4 sm:$0xff]   ;;  %v2035_v18 = vld [vmem:[#allocation10 + $0xa0] ss:$16 sps:$4 sm:$0xff]   ;;  %v88_v44 = vshrl.u32 %v87_v43, 7 }
  0x30   :  { %1584 = vmatmul.mubr.msk.bf16.vlgmr.msra.gmra.mxu0 %vm147_vm0, %v1666_v6  ;;  %1588 = vmatmul.mubr.msk.bf16.vlgmr.msra.gmra.mxu1 %vm147_vm0, %v1666_v6  ;;  %v2032_v17 = vld [vmem:[#allocation10 + $0xac] ss:$16 sps:$4 sm:$0xff]   ;;  %v2037_v19 = vld [vmem:[#allocation10 + $0xa8] ss:$16 sps:$4 sm:$0xff]   ;;  %v2041_v20 = vld [vmem:[#allocation10 + $0x84] ss:$16 sps:$4 sm:$0xff]  }
  0x31   :  { %542 = vmatpush1.bf16.msra.mxu0 %v2008_v9  ;;  %583 = vmatpush1.bf16.msra.mxu1 %v2011_v10  ;;  %v2044_v21 = vld [vmem:[#allocation10 + $0x8c] ss:$16 sps:$4 sm:$0xff]   ;;  %v2048_v22 = vld [vmem:[#allocation10 + $0x80] ss:$16 sps:$4 sm:$0xff]   ;;  %v2051_v23 = vld [vmem:[#allocation10 + $0x88] ss:$16 sps:$4 sm:$0xff]  }
  0x32   :  { %543 = vmatprep.subr.bf16.mxu0 %v2015_v11  ;;  %584 = vmatprep.subr.bf16.mxu1 %v2019_v12  ;;  %v2056_v24 = vld [vmem:[#allocation10 + $0x64] ss:$16 sps:$4 sm:$0xff]   ;;  %v2060_v25 = vld [vmem:[#allocation10 + $0x6c] ss:$16 sps:$4 sm:$0xff]   ;;  %v2063_v27 = vld [vmem:[#allocation10 + $0x60] ss:$16 sps:$4 sm:$0xff]  }
  0x33   :  { %202 = vmatprep.mubr.bf16.mxu0 %v2550_v1  ;;  %275 = vmatprep.mubr.bf16.mxu1 %v2550_v1  ;;  %v1692_v26 = vld [vmem:[#allocation6 + $0x10] sm:$0xff]   ;;  %v2067_v28 = vld [vmem:[#allocation10 + $0x68] ss:$16 sps:$4 sm:$0xff]   ;;  %v2072_v30 = vld [vmem:[#allocation10 + $0x4c] ss:$16 sps:$4 sm:$0xff]   ;;  %v97_v45 = vsub.s32 2, %v88_v44 }
  0x34   :  { %v2069_v29 = vld [vmem:[#allocation10 + $0x44] ss:$16 sps:$4 sm:$0xff]   ;;  %v2077_v31 = vld [vmem:[#allocation10 + $0x40] ss:$16 sps:$4 sm:$0xff]   ;;  %v2079_v32 = vld [vmem:[#allocation10 + $0x48] ss:$16 sps:$4 sm:$0xff]  }
  0x35   :  { %544 = vmatpush1.bf16.msra.mxu0 %v2021_v13  ;;  %585 = vmatpush1.bf16.msra.mxu1 %v2023_v14  ;;  %v2084_v33 = vld [vmem:[#allocation10 + $0x24] ss:$16 sps:$4 sm:$0xff]   ;;  %v2088_v34 = vld [vmem:[#allocation10 + $0x2c] ss:$16 sps:$4 sm:$0xff]   ;;  %v2091_v36 = vld [vmem:[#allocation10 + $0x20] ss:$16 sps:$4 sm:$0xff]  }
  0x36   :  { %545 = vmatprep.subr.bf16.mxu0 %v2029_v16  ;;  %586 = vmatprep.subr.bf16.mxu1 %v2032_v17  ;;  %v1705_v35 = vld [vmem:[#allocation6 + $0x18] sm:$0xff]   ;;  %v2097_v38 = vld [vmem:[#allocation10 + $0x4] ss:$16 sps:$4 sm:$0xff]   ;;  %v2105_v40 = vld [vmem:[#allocation10] ss:$16 sps:$4 sm:$0xff]   ;;  %v89_v46 = vsub.s32 0, %v88_v44 }
  0x37   :  { %v2095_v37 = vld [vmem:[#allocation10 + $0x28] ss:$16 sps:$4 sm:$0xff]   ;;  %v2100_v39 = vld [vmem:[#allocation10 + $0xc] ss:$16 sps:$4 sm:$0xff]   ;;  %v101_v47 = vsub.s32 3, %v88_v44  ;;  %v93_v52 = vsub.s32 1, %v88_v44 }
  0x38   :  { %1585 = vmatmul.mubr.msk.bf16.gmra.mxu0 %vm147_vm0, %v1679_v15  ;;  %1589 = vmatmul.mubr.msk.bf16.gmra.mxu1 %vm147_vm0, %v1679_v15  ;;  %v2110_v41 = vld [vmem:[#allocation10 + $0x8] ss:$16 sps:$4 sm:$0xff]   ;;  %v85_v48 = vld [vmem:[%s2546_s3] sm:$0xf]  ;;  %vm1561_vm1 = vcmask 7168  }
  0x39   :  { %546 = vmatpush1.bf16.msra.mxu0 %v2035_v18  ;;  %212 = vmatprep.mubr.bf16.mxu0 %v2550_v1  ;;  %v2159_v51 = vrot.slane %v85_v48, %v97_v45  ;;  %v90_v55 = vrot.slane %v85_v48, %v89_v46  ;;  %v2165_v56 = vrot.slane %v85_v48, %v101_v47 }
  0x3a   :  { %587 = vmatpush1.bf16.msra.mxu1 %v2037_v19  ;;  %547 = vmatprep.subr.bf16.mxu0 %v2041_v20  ;;  %v94_v59 = vrot.slane %v85_v48, %v93_v52 }
  0x3b   :  { %588 = vmatprep.subr.bf16.mxu1 %v2044_v21  ;;  %285 = vmatprep.mubr.bf16.mxu1 %v2550_v1 }
  0x3d   :  { %548 = vmatpush1.bf16.msra.mxu0 %v2048_v22 }
  0x3e   :  { %589 = vmatpush1.bf16.msra.mxu1 %v2051_v23  ;;  %549 = vmatprep.subr.bf16.mxu0 %v2056_v24 }
  0x3f   :  { %590 = vmatprep.subr.bf16.mxu1 %v2060_v25 }
  0x40   :  { %1586 = vmatmul.mubr.msk.bf16.gmra.mxu0 %vm147_vm0, %v1692_v26  ;;  %1590 = vmatmul.mubr.msk.bf16.gmra.mxu1 %vm147_vm0, %v1692_v26 }
  0x41   :  { %550 = vmatpush1.bf16.msra.mxu0 %v2063_v27  ;;  %222 = vmatprep.mubr.bf16.mxu0 %v2550_v1 }
  0x42   :  { %591 = vmatpush1.bf16.msra.mxu1 %v2067_v28  ;;  %551 = vmatprep.subr.bf16.mxu0 %v2069_v29 }
  0x43   :  { %592 = vmatprep.subr.bf16.mxu1 %v2072_v30  ;;  %295 = vmatprep.mubr.bf16.mxu1 %v2550_v1 }
  0x45   :  { %552 = vmatpush1.bf16.msra.mxu0 %v2077_v31 }
  0x46   :  { %593 = vmatpush1.bf16.msra.mxu1 %v2079_v32  ;;  %553 = vmatprep.subr.bf16.mxu0 %v2084_v33 }
  0x47   :  { %594 = vmatprep.subr.bf16.mxu1 %v2088_v34 }
  0x48   :  { %1587 = vmatmul.mubr.msk.bf16.gmra.mxu0 %vm147_vm0, %v1705_v35  ;;  %1591 = vmatmul.mubr.msk.bf16.gmra.mxu1 %vm147_vm0, %v1705_v35 }
  0x49   :  { %554 = vmatpush1.bf16.msra.mxu0 %v2091_v36  ;;  %573 = vmatprep.mubr.bf16.mxu0 %v2550_v1 }
  0x4a   :  { %595 = vmatpush1.bf16.msra.mxu1 %v2095_v37  ;;  %555 = vmatprep.subr.bf16.mxu0 %v2097_v38 }
  0x4b   :  { %596 = vmatprep.subr.bf16.mxu1 %v2100_v39  ;;  %614 = vmatprep.mubr.bf16.mxu1 %v2550_v1 }
  0x4d   :  { %556 = vmatpush1.bf16.msra.mxu0 %v2105_v40 }
  0x4e   :  { %597 = vmatpush1.bf16.msra.mxu1 %v2110_v41  ;;  %665 = vmatprep.subr.bf16.mxu0 %v2004_v7 }
  0x4f   :  { %706 = vmatprep.subr.bf16.mxu1 %v2006_v8 }
  0x50   :  { %574 = vmatmul.mubr.bf16.vlgmr.msra.gmra.mxu0 %v1954_v42 }
  0x51   :  { %615 = vmatmul.mubr.bf16.vlgmr.msra.gmra.mxu1 %v1954_v42  ;;  %666 = vmatpush1.bf16.msra.mxu0 %v2008_v9 }
  0x52   :  { %707 = vmatpush1.bf16.msra.mxu1 %v2011_v10  ;;  %667 = vmatprep.subr.bf16.mxu0 %v2015_v11 }
  0x53   :  { %708 = vmatprep.subr.bf16.mxu1 %v2019_v12  ;;  %697 = vmatprep.mubr.bf16.mxu0 %v2550_v1 }
  0x54   :  { %738 = vmatprep.mubr.bf16.mxu1 %v2550_v1 }
  0x55   :  { %668 = vmatpush1.bf16.msra.mxu0 %v2021_v13 }
  0x56   :  { %709 = vmatpush1.bf16.msra.mxu1 %v2023_v14  ;;  %669 = vmatprep.subr.bf16.mxu0 %v2029_v16 }
  0x57   :  { %710 = vmatprep.subr.bf16.mxu1 %v2032_v17 }
  0x59   :  { %670 = vmatpush1.bf16.msra.mxu0 %v2035_v18 }
  0x5a   :  { %711 = vmatpush1.bf16.msra.mxu1 %v2037_v19  ;;  %671 = vmatprep.subr.bf16.mxu0 %v2041_v20 }
  0x5b   :  { %712 = vmatprep.subr.bf16.mxu1 %v2044_v21 }
  0x5d   :  { %672 = vmatpush1.bf16.msra.mxu0 %v2048_v22 }
  0x5e   :  { %713 = vmatpush1.bf16.msra.mxu1 %v2051_v23  ;;  %673 = vmatprep.subr.bf16.mxu0 %v2056_v24 }
  0x5f   :  { %714 = vmatprep.subr.bf16.mxu1 %v2060_v25 }
  0x61   :  { %674 = vmatpush1.bf16.msra.mxu0 %v2063_v27 }
  0x62   :  { %715 = vmatpush1.bf16.msra.mxu1 %v2067_v28  ;;  %675 = vmatprep.subr.bf16.mxu0 %v2069_v29 }
  0x63   :  { %716 = vmatprep.subr.bf16.mxu1 %v2072_v30 }
  0x65   :  { %676 = vmatpush1.bf16.msra.mxu0 %v2077_v31 }
  0x66   :  { %717 = vmatpush1.bf16.msra.mxu1 %v2079_v32  ;;  %677 = vmatprep.subr.bf16.mxu0 %v2084_v33 }
  0x67   :  { %718 = vmatprep.subr.bf16.mxu1 %v2088_v34 }
  0x69   :  { %678 = vmatpush1.bf16.msra.mxu0 %v2091_v36 }
  0x6a   :  { %719 = vmatpush1.bf16.msra.mxu1 %v2095_v37  ;;  %679 = vmatprep.subr.bf16.mxu0 %v2097_v38 }
  0x6b   :  { %720 = vmatprep.subr.bf16.mxu1 %v2100_v39 }
  0x6d   :  { %680 = vmatpush1.bf16.msra.mxu0 %v2105_v40 }
  0x6e   :  { %721 = vmatpush1.bf16.msra.mxu1 %v2110_v41  ;;  %790 = vmatprep.subr.bf16.mxu0 %v2004_v7 }
  0x6f   :  { %831 = vmatprep.subr.bf16.mxu1 %v2006_v8 }
  0xf0   :  { %v2155_v49 = vpop.f32.mrf.mxu0  ;;  %v2157_v50 = vpop.f32.mrf.mxu1 }
  0xf2   :  { %v2161_v53 = vpop.f32.mrf.mxu0  ;;  %v2163_v54 = vpop.f32.mrf.mxu1 }
  0xf4   :  { %v198_v57 = vpop.f32.mrf.mxu0  ;;  %v271_v58 = vpop.f32.mrf.mxu1 }
  0xf5   :  { %v2167_v60 = vadd.f32 %v198_v57, %v90_v55  ;;  %v2170_v61 = vadd.f32 %v271_v58, %v2159_v51 }
  0xf6   :  { %v200_v62 = vpop.f32.mrf.mxu0  ;;  %v273_v63 = vpop.f32.mrf.mxu1 }
  0xf7   :  { %v2172_v0 = vadd.f32 %v200_v62, %v94_v59  ;;  %v2175_v2 = vadd.f32 %v273_v63, %v2165_v56 }
  0xf8   :  { %v204_v3 = vpop.f32.mrf.mxu0  ;;  %v277_v4 = vpop.f32.mrf.mxu1 }
  0xf9   :  { %v2177_v5 = vadd.f32 %v204_v3, %v90_v55  ;;  %v2180_v6 = vadd.f32 %v277_v4, %v2159_v51 }
  0xfa   :  { %v206_v15 = vpop.f32.mrf.mxu0  ;;  %v279_v26 = vpop.f32.mrf.mxu1 }
  0xfb   :  { %2552 = vst [vmem:[#allocation13_spill] sm:$0xff] %v2180_v6  ;;  %v2182_v35 = vadd.f32 %v206_v15, %v94_v59  ;;  %v2185_v42 = vadd.f32 %v279_v26, %v2165_v56 }
  0xfc   :  { %v208_v43 = vpop.f32.mrf.mxu0  ;;  %v281_v44 = vpop.f32.mrf.mxu1 }
  0xfd   :  { %v2187_v45 = vadd.f32 %v208_v43, %v90_v55  ;;  %v2190_v46 = vadd.f32 %v281_v44, %v2159_v51 }
  0xfe   :  { %v210_v47 = vpop.f32.mrf.mxu0  ;;  %v283_v48 = vpop.f32.mrf.mxu1 }
  0xff   :  { %2553 = vst [vmem:[#allocation14_spill] sm:$0xff] %v2187_v45  ;;  %2554 = vst [vmem:[#allocation15_spill] sm:$0xff] %v2190_v46  ;;  %v2192_v52 = vadd.f32 %v210_v47, %v94_v59  ;;  %v2195_v57 = vadd.f32 %v283_v48, %v2165_v56 }
 0x100   :  { %v214_v58 = vpop.f32.mrf.mxu0  ;;  %v287_v62 = vpop.f32.mrf.mxu1 }
 0x101   :  { %2555 = vst [vmem:[#allocation16_spill] sm:$0xff] %v2192_v52  ;;  %2556 = vst [vmem:[#allocation17_spill] sm:$0xff] %v2195_v57  ;;  %v2197_v63 = vadd.f32 %v214_v58, %v90_v55  ;;  %v2200_v3 = vadd.f32 %v287_v62, %v2159_v51 }
 0x102   :  { %v216_v4 = vpop.f32.mrf.mxu0  ;;  %v289_v15 = vpop.f32.mrf.mxu1 }
 0x103   :  { %2557 = vst [vmem:[#allocation18_spill] sm:$0xff] %v2197_v63  ;;  %2558 = vst [vmem:[#allocation19_spill] sm:$0xff] %v2200_v3  ;;  %v2202_v26 = vadd.f32 %v216_v4, %v94_v59  ;;  %v2205_v43 = vadd.f32 %v289_v15, %v2165_v56 }
 0x104   :  { %v218_v44 = vpop.f32.mrf.mxu0  ;;  %v291_v47 = vpop.f32.mrf.mxu1 }
 0x105   :  { %2559 = vst [vmem:[#allocation20_spill] sm:$0xff] %v2202_v26  ;;  %2560 = vst [vmem:[#allocation21_spill] sm:$0xff] %v2205_v43  ;;  %v2207_v1 = vadd.f32 %v218_v44, %v90_v55  ;;  %v2210_v48 = vadd.f32 %v291_v47, %v2159_v51 }
 0x106   :  { %v220_v46 = vpop.f32.mrf.mxu0  ;;  %v293_v58 = vpop.f32.mrf.mxu1 }
 0x107   :  { %2561 = vst [vmem:[#allocation22_spill] sm:$0xff] %v2207_v1  ;;  %2562 = vst [vmem:[#allocation23_spill] sm:$0xff] %v2210_v48  ;;  %v2212_v63 = vadd.f32 %v220_v46, %v94_v59  ;;  %v2215_v62 = vadd.f32 %v293_v58, %v2165_v56 }
 0x108   :  { %v224_v3 = vpop.f32.mrf.mxu0  ;;  %v297_v4 = vpop.f32.mrf.mxu1 }
 0x109   :  { %2563 = vst [vmem:[#allocation24_spill] sm:$0xff] %v2212_v63  ;;  %2564 = vst [vmem:[#allocation25_spill] sm:$0xff] %v2215_v62  ;;  %v2217_v26 = vadd.f32 %v224_v3, %v90_v55  ;;  %v2220_v15 = vadd.f32 %v297_v4, %v2159_v51 }
 0x10a   :  { %v226_v43 = vpop.f32.mrf.mxu0  ;;  %v299_v44 = vpop.f32.mrf.mxu1 }
 0x10b   :  { %2565 = vst [vmem:[#allocation26_spill] sm:$0xff] %v2217_v26  ;;  %2566 = vst [vmem:[#allocation27_spill] sm:$0xff] %v2220_v15  ;;  %v2222_v1 = vadd.f32 %v226_v43, %v94_v59  ;;  %v2225_v47 = vadd.f32 %v299_v44, %v2165_v56  ;;  %v195_v26 = vadd.f32 %v2155_v49, %v90_v55 }
 0x10c   :  { %v228_v48 = vpop.f32.mrf.mxu0  ;;  %v301_v46 = vpop.f32.mrf.mxu1  ;;  %v197_v44 = vadd.f32 %v2161_v53, %v94_v59  ;;  %v268_v53 = vadd.f32 %v2157_v50, %v2159_v51 }
 0x10d   :  { %2567 = vst [vmem:[#allocation28_spill] sm:$0xff] %v2222_v1  ;;  %2568 = vst [vmem:[#allocation29_spill] sm:$0xff] %v2225_v47  ;;  %v2227_v63 = vadd.f32 %v228_v48, %v90_v55  ;;  %v2230_v58 = vadd.f32 %v301_v46, %v2159_v51  ;;  %v270_v55 = vadd.f32 %v2163_v54, %v2165_v56 }
 0x10e   :  { %v230_v62 = vpop.f32.mrf.mxu0  ;;  %v303_v3 = vpop.f32.mrf.mxu1 }
 0x10f   :  { %2569 = vst [vmem:[#allocation30_spill] sm:$0xff] %v2227_v63  ;;  %2570 = vst [vmem:[#allocation31_spill] sm:$0xff] %v2230_v58  ;;  %v2233_v4 = vadd.f32 %v230_v62, %v94_v59  ;;  %v2236_v15 = vadd.f32 %v303_v3, %v2165_v56 }
 0x110   :  { %v575_v43 = vpop.f32.mrf.mxu0 }
 0x111   :  { %v623_v47 = vadd.f32 %v575_v43, %v195_v26  ;;  %v616_v1 = vpop.f32.mrf.mxu1 }
 0x112   :  { %v577_v57 = vpop.f32.mrf.mxu0  ;;  %v625_v3 = vadd.f32 %v616_v1, %v268_v53 }
 0x113   :  { %v1624_v48 = vmul.f32 -1.442695, %v623_v47  ;;  %v624_v63 = vadd.f32 %v577_v57, %v197_v44  ;;  %v618_v52 = vpop.f32.mrf.mxu1 }
 0x114   :  { %v579_v46 = vpop.f32.mrf.mxu0  ;;  %v626_v62 = vadd.f32 %v618_v52, %v270_v55 }
 0x115   :  { %1718 = vpow2.f32 %v1624_v48  ;;  %v1625_v58 = vmul.f32 -1.442695, %v624_v63  ;;  %v620_v45 = vpop.f32.mrf.mxu1  ;;  %v2571_v46 = vmov 0  }
 0x116   :  { %v580_v6 = vpop.f32.mrf.mxu0  ;;  %v1626_v59 = vmul.f32 -1.442695, %v626_v62 }
 0x117   :  { %1720 = vpow2.f32 %v1625_v58  ;;  %v621_v49 = vpop.f32.mrf.mxu1 }
 0x118   :  { %1722 = vpow2.f32 %v1626_v59 }
 0x122   :  { %v1719_v26 = vpop.eup %1718 }
 0x123   :  { %v630_v47 = vadd.f32 1.0, %v1719_v26 }
 0x124   :  { %v1721_v57 = vpop.eup %1720 }
 0x125   :  { %1724 = vrcp.f32 %v630_v47  ;;  %v636_v43 = vadd.f32 1.0, %v1721_v57  ;;  %v1723_v6 = vpop.eup %1722 }
 0x126   :  { %1726 = vtanh.f32 %v625_v3  ;;  %v643_v44 = vadd.f32 1.0, %v1723_v6 }
 0x127   :  { %1728 = vrcp.f32 %v636_v43 }
 0x128   :  { %1730 = vrcp.f32 %v643_v44 }
 0x132   :  { %v1725_v45 = vpop.eup %1724 }
 0x133   :  { %v1727_v63 = vpop.eup %1726 }
 0x134   :  { %v1729_v58 = vpop.eup %1728  ;;  %v647_v56 = vmul.f32 %v1727_v63, %v1725_v45 }
 0x135   :  { %v646_v54 = vmul.f32 0.0, %v1729_v58  ;;  %v1731_v1 = vpop.eup %1730 }
 0x137   :  { %v2243_v52 = vadd.f32 %v647_v56, %v646_v54 }
 0x139   :  { %1732 = vtanh.f32 %v2243_v52 }
 0x146   :  { %v1733_v50 = vpop.eup %1732 }
 0x147   :  { %v650_v51 = vmul.f32 %v1733_v50, %v1731_v1 }
 0x149   :  { %v664_v48 = vpack.c.bf16 %v650_v51, %v650_v51 }
 0x14b   :  { %698 = vmatmul.mubr.bf16.vlgmr.msra.gmra.mxu0 %v664_v48  ;;  %739 = vmatmul.mubr.bf16.vlgmr.msra.gmra.mxu1 %v664_v48 }
 0x14c   :  { %791 = vmatpush1.bf16.msra.mxu0 %v2008_v9  ;;  %832 = vmatpush1.bf16.msra.mxu1 %v2011_v10 }
 0x14d   :  { %792 = vmatprep.subr.bf16.mxu0 %v2015_v11  ;;  %833 = vmatprep.subr.bf16.mxu1 %v2019_v12 }
 0x14e   :  { %822 = vmatprep.mubr.bf16.mxu0 %v2571_v46  ;;  %863 = vmatprep.mubr.bf16.mxu1 %v2571_v46 }
 0x150   :  { %793 = vmatpush1.bf16.msra.mxu0 %v2021_v13  ;;  %834 = vmatpush1.bf16.msra.mxu1 %v2023_v14 }
 0x151   :  { %794 = vmatprep.subr.bf16.mxu0 %v2029_v16  ;;  %835 = vmatprep.subr.bf16.mxu1 %v2032_v17 }
 0x154   :  { %795 = vmatpush1.bf16.msra.mxu0 %v2035_v18  ;;  %836 = vmatpush1.bf16.msra.mxu1 %v2037_v19 }
 0x155   :  { %796 = vmatprep.subr.bf16.mxu0 %v2041_v20  ;;  %837 = vmatprep.subr.bf16.mxu1 %v2044_v21 }
 0x158   :  { %797 = vmatpush1.bf16.msra.mxu0 %v2048_v22  ;;  %838 = vmatpush1.bf16.msra.mxu1 %v2051_v23 }
 0x159   :  { %798 = vmatprep.subr.bf16.mxu0 %v2056_v24  ;;  %839 = vmatprep.subr.bf16.mxu1 %v2060_v25 }
 0x15c   :  { %799 = vmatpush1.bf16.msra.mxu0 %v2063_v27  ;;  %840 = vmatpush1.bf16.msra.mxu1 %v2067_v28 }
 0x15d   :  { %800 = vmatprep.subr.bf16.mxu0 %v2069_v29  ;;  %841 = vmatprep.subr.bf16.mxu1 %v2072_v30 }
 0x160   :  { %801 = vmatpush1.bf16.msra.mxu0 %v2077_v31  ;;  %842 = vmatpush1.bf16.msra.mxu1 %v2079_v32 }
 0x161   :  { %802 = vmatprep.subr.bf16.mxu0 %v2084_v33  ;;  %843 = vmatprep.subr.bf16.mxu1 %v2088_v34 }
 0x164   :  { %803 = vmatpush1.bf16.msra.mxu0 %v2091_v36  ;;  %844 = vmatpush1.bf16.msra.mxu1 %v2095_v37 }
 0x165   :  { %804 = vmatprep.subr.bf16.mxu0 %v2097_v38  ;;  %845 = vmatprep.subr.bf16.mxu1 %v2100_v39 }
 0x168   :  { %805 = vmatpush1.bf16.msra.mxu0 %v2105_v40  ;;  %846 = vmatpush1.bf16.msra.mxu1 %v2110_v41 }
 0x169   :  { %915 = vmatprep.subr.bf16.mxu0 %v2004_v7  ;;  %956 = vmatprep.subr.bf16.mxu1 %v2006_v8 }
 0x20b   :  { %v699_v49 = vpop.f32.mrf.mxu0  ;;  %v740_v55 = vpop.f32.mrf.mxu1 }
 0x20c   :  { %v747_v62 = vadd.f32 %v699_v49, %v2167_v60  ;;  %v749_v58 = vadd.f32 %v740_v55, %v2170_v61 }
 0x20d   :  { %v701_v53 = vpop.f32.mrf.mxu0  ;;  %v742_v59 = vpop.f32.mrf.mxu1 }
 0x20e   :  { %v1627_v26 = vmul.f32 -1.442695, %v747_v62  ;;  %v748_v3 = vadd.f32 %v701_v53, %v2172_v0  ;;  %v750_v63 = vadd.f32 %v742_v59, %v2175_v2 }
 0x20f   :  { %v703_v47 = vpop.f32.mrf.mxu0  ;;  %v744_v57 = vpop.f32.mrf.mxu1 }
 0x210   :  { %1734 = vpow2.f32 %v1627_v26  ;;  %v1628_v43 = vmul.f32 -1.442695, %v748_v3  ;;  %v1629_v44 = vmul.f32 -1.442695, %v750_v63 }
 0x211   :  { %v704_v6 = vpop.f32.mrf.mxu0  ;;  %v745_v45 = vpop.f32.mrf.mxu1 }
 0x212   :  { %1736 = vpow2.f32 %v1628_v43 }
 0x213   :  { %1738 = vtanh.f32 %v749_v58 }
 0x214   :  { %1740 = vpow2.f32 %v1629_v44 }
 0x21d   :  { %v1735_v54 = vpop.eup %1734 }
 0x21e   :  { %v754_v56 = vadd.f32 1.0, %v1735_v54 }
 0x21f   :  { %v1737_v60 = vpop.eup %1736 }
 0x220   :  { %1742 = vrcp.f32 %v754_v56  ;;  %v760_v1 = vadd.f32 1.0, %v1737_v60  ;;  %v1739_v0 = vpop.eup %1738 }
 0x221   :  { %v1741_v50 = vpop.eup %1740 }
 0x222   :  { %1744 = vrcp.f32 %v760_v1  ;;  %v767_v62 = vadd.f32 1.0, %v1741_v50  ;;  %v2572_v1 = vld [vmem:[#allocation13_spill] sm:$0xff] }
 0x224   :  { %1746 = vrcp.f32 %v767_v62 }
 0x22d   :  { %v1743_v51 = vpop.eup %1742 }
 0x22e   :  { %v771_v48 = vmul.f32 %v1743_v51, %v1739_v0 }
 0x22f   :  { %v1745_v49 = vpop.eup %1744 }
 0x230   :  { %v770_v53 = vmul.f32 %v1745_v49, %v2243_v52 }
 0x231   :  { %v1747_v61 = vpop.eup %1746 }
 0x232   :  { %v2285_v2 = vadd.f32 %v771_v48, %v770_v53 }
 0x234   :  { %1748 = vtanh.f32 %v2285_v2 }
 0x241   :  { %v1749_v55 = vpop.eup %1748 }
 0x242   :  { %v774_v59 = vmul.f32 %v1749_v55, %v1747_v61 }
 0x244   :  { %v789_v26 = vpack.c.bf16 %v774_v59, %v774_v59 }
 0x246   :  { %823 = vmatmul.mubr.bf16.vlgmr.msra.gmra.mxu0 %v789_v26  ;;  %864 = vmatmul.mubr.bf16.vlgmr.msra.gmra.mxu1 %v789_v26 }
 0x247   :  { %916 = vmatpush1.bf16.msra.mxu0 %v2008_v9  ;;  %957 = vmatpush1.bf16.msra.mxu1 %v2011_v10 }
 0x248   :  { %917 = vmatprep.subr.bf16.mxu0 %v2015_v11  ;;  %958 = vmatprep.subr.bf16.mxu1 %v2019_v12 }
 0x249   :  { %947 = vmatprep.mubr.bf16.mxu0 %v2571_v46  ;;  %988 = vmatprep.mubr.bf16.mxu1 %v2571_v46 }
 0x24b   :  { %918 = vmatpush1.bf16.msra.mxu0 %v2021_v13  ;;  %959 = vmatpush1.bf16.msra.mxu1 %v2023_v14 }
 0x24c   :  { %919 = vmatprep.subr.bf16.mxu0 %v2029_v16  ;;  %960 = vmatprep.subr.bf16.mxu1 %v2032_v17 }
 0x24f   :  { %920 = vmatpush1.bf16.msra.mxu0 %v2035_v18  ;;  %961 = vmatpush1.bf16.msra.mxu1 %v2037_v19 }
 0x250   :  { %921 = vmatprep.subr.bf16.mxu0 %v2041_v20  ;;  %962 = vmatprep.subr.bf16.mxu1 %v2044_v21 }
 0x253   :  { %922 = vmatpush1.bf16.msra.mxu0 %v2048_v22  ;;  %963 = vmatpush1.bf16.msra.mxu1 %v2051_v23 }
 0x254   :  { %923 = vmatprep.subr.bf16.mxu0 %v2056_v24  ;;  %964 = vmatprep.subr.bf16.mxu1 %v2060_v25 }
 0x257   :  { %924 = vmatpush1.bf16.msra.mxu0 %v2063_v27  ;;  %965 = vmatpush1.bf16.msra.mxu1 %v2067_v28 }
 0x258   :  { %925 = vmatprep.subr.bf16.mxu0 %v2069_v29  ;;  %966 = vmatprep.subr.bf16.mxu1 %v2072_v30 }
 0x25b   :  { %926 = vmatpush1.bf16.msra.mxu0 %v2077_v31  ;;  %967 = vmatpush1.bf16.msra.mxu1 %v2079_v32 }
 0x25c   :  { %927 = vmatprep.subr.bf16.mxu0 %v2084_v33  ;;  %968 = vmatprep.subr.bf16.mxu1 %v2088_v34 }
 0x25f   :  { %928 = vmatpush1.bf16.msra.mxu0 %v2091_v36  ;;  %969 = vmatpush1.bf16.msra.mxu1 %v2095_v37 }
 0x260   :  { %929 = vmatprep.subr.bf16.mxu0 %v2097_v38  ;;  %970 = vmatprep.subr.bf16.mxu1 %v2100_v39 }
 0x263   :  { %930 = vmatpush1.bf16.msra.mxu0 %v2105_v40  ;;  %971 = vmatpush1.bf16.msra.mxu1 %v2110_v41 }
 0x264   :  { %1040 = vmatprep.subr.bf16.mxu0 %v2004_v7  ;;  %1081 = vmatprep.subr.bf16.mxu1 %v2006_v8 }
 0x306   :  { %v824_v52 = vpop.f32.mrf.mxu0  ;;  %v865_v3 = vpop.f32.mrf.mxu1 }
 0x307   :  { %v872_v47 = vadd.f32 %v824_v52, %v2177_v5  ;;  %v874_v0 = vadd.f32 %v865_v3, %v2572_v1 }
 0x308   :  { %v826_v57 = vpop.f32.mrf.mxu0  ;;  %v867_v43 = vpop.f32.mrf.mxu1 }
 0x309   :  { %v1630_v6 = vmul.f32 -1.442695, %v872_v47  ;;  %v873_v45 = vadd.f32 %v826_v57, %v2182_v35  ;;  %v875_v60 = vadd.f32 %v867_v43, %v2185_v42 }
 0x30a   :  { %v828_v63 = vpop.f32.mrf.mxu0  ;;  %v869_v58 = vpop.f32.mrf.mxu1 }
 0x30b   :  { %1750 = vpow2.f32 %v1630_v6  ;;  %v1631_v44 = vmul.f32 -1.442695, %v873_v45  ;;  %v1632_v50 = vmul.f32 -1.442695, %v875_v60  ;;  %v2573_v6 = vld [vmem:[#allocation14_spill] sm:$0xff] }
 0x30c   :  { %v829_v54 = vpop.f32.mrf.mxu0  ;;  %v870_v56 = vpop.f32.mrf.mxu1 }
 0x30d   :  { %1752 = vpow2.f32 %v1631_v44  ;;  %v2574_v54 = vld [vmem:[#allocation16_spill] sm:$0xff] }
 0x30e   :  { %1754 = vtanh.f32 %v874_v0 }
 0x30f   :  { %1756 = vpow2.f32 %v1632_v50 }
 0x318   :  { %v1751_v51 = vpop.eup %1750 }
 0x319   :  { %v879_v48 = vadd.f32 1.0, %v1751_v51 }
 0x31a   :  { %v1753_v5 = vpop.eup %1752 }
 0x31b   :  { %1758 = vrcp.f32 %v879_v48  ;;  %v885_v49 = vadd.f32 1.0, %v1753_v5  ;;  %v1755_v35 = vpop.eup %1754  ;;  %v2575_v48 = vld [vmem:[#allocation17_spill] sm:$0xff]  ;;  %v2576_v5 = vld [vmem:[#allocation15_spill] sm:$0xff] }
 0x31c   :  { %v1757_v62 = vpop.eup %1756 }
 0x31d   :  { %1760 = vrcp.f32 %v885_v49  ;;  %v892_v59 = vadd.f32 1.0, %v1757_v62 }
 0x31f   :  { %1762 = vrcp.f32 %v892_v59 }
 0x328   :  { %v1759_v53 = vpop.eup %1758 }
 0x329   :  { %v896_v61 = vmul.f32 %v1759_v53, %v1755_v35 }
 0x32a   :  { %v1761_v55 = vpop.eup %1760 }
 0x32b   :  { %v895_v26 = vmul.f32 %v1761_v55, %v2285_v2 }
 0x32c   :  { %v1763_v52 = vpop.eup %1762 }
 0x32d   :  { %v2327_v42 = vadd.f32 %v896_v61, %v895_v26 }
 0x32f   :  { %1764 = vtanh.f32 %v2327_v42 }
 0x33c   :  { %v1765_v3 = vpop.eup %1764 }
 0x33d   :  { %v899_v47 = vmul.f32 %v1765_v3, %v1763_v52 }
 0x33f   :  { %v914_v57 = vpack.c.bf16 %v899_v47, %v899_v47 }
 0x341   :  { %948 = vmatmul.mubr.bf16.vlgmr.msra.gmra.mxu0 %v914_v57  ;;  %989 = vmatmul.mubr.bf16.vlgmr.msra.gmra.mxu1 %v914_v57 }
 0x342   :  { %1041 = vmatpush1.bf16.msra.mxu0 %v2008_v9  ;;  %1082 = vmatpush1.bf16.msra.mxu1 %v2011_v10 }
 0x343   :  { %1042 = vmatprep.subr.bf16.mxu0 %v2015_v11  ;;  %1083 = vmatprep.subr.bf16.mxu1 %v2019_v12 }
 0x344   :  { %1072 = vmatprep.mubr.bf16.mxu0 %v2571_v46  ;;  %1113 = vmatprep.mubr.bf16.mxu1 %v2571_v46 }
 0x346   :  { %1043 = vmatpush1.bf16.msra.mxu0 %v2021_v13  ;;  %1084 = vmatpush1.bf16.msra.mxu1 %v2023_v14 }
 0x347   :  { %1044 = vmatprep.subr.bf16.mxu0 %v2029_v16  ;;  %1085 = vmatprep.subr.bf16.mxu1 %v2032_v17 }
 0x34a   :  { %1045 = vmatpush1.bf16.msra.mxu0 %v2035_v18  ;;  %1086 = vmatpush1.bf16.msra.mxu1 %v2037_v19 }
 0x34b   :  { %1046 = vmatprep.subr.bf16.mxu0 %v2041_v20  ;;  %1087 = vmatprep.subr.bf16.mxu1 %v2044_v21 }
 0x34e   :  { %1047 = vmatpush1.bf16.msra.mxu0 %v2048_v22  ;;  %1088 = vmatpush1.bf16.msra.mxu1 %v2051_v23 }
 0x34f   :  { %1048 = vmatprep.subr.bf16.mxu0 %v2056_v24  ;;  %1089 = vmatprep.subr.bf16.mxu1 %v2060_v25 }
 0x352   :  { %1049 = vmatpush1.bf16.msra.mxu0 %v2063_v27  ;;  %1090 = vmatpush1.bf16.msra.mxu1 %v2067_v28 }
 0x353   :  { %1050 = vmatprep.subr.bf16.mxu0 %v2069_v29  ;;  %1091 = vmatprep.subr.bf16.mxu1 %v2072_v30 }
 0x356   :  { %1051 = vmatpush1.bf16.msra.mxu0 %v2077_v31  ;;  %1092 = vmatpush1.bf16.msra.mxu1 %v2079_v32 }
 0x357   :  { %1052 = vmatprep.subr.bf16.mxu0 %v2084_v33  ;;  %1093 = vmatprep.subr.bf16.mxu1 %v2088_v34 }
 0x35a   :  { %1053 = vmatpush1.bf16.msra.mxu0 %v2091_v36  ;;  %1094 = vmatpush1.bf16.msra.mxu1 %v2095_v37 }
 0x35b   :  { %1054 = vmatprep.subr.bf16.mxu0 %v2097_v38  ;;  %1095 = vmatprep.subr.bf16.mxu1 %v2100_v39 }
 0x35e   :  { %1055 = vmatpush1.bf16.msra.mxu0 %v2105_v40  ;;  %1096 = vmatpush1.bf16.msra.mxu1 %v2110_v41 }
 0x35f   :  { %1165 = vmatprep.subr.bf16.mxu0 %v2004_v7  ;;  %1206 = vmatprep.subr.bf16.mxu1 %v2006_v8 }
 0x401   :  { %v949_v2 = vpop.f32.mrf.mxu0  ;;  %v990_v43 = vpop.f32.mrf.mxu1 }
 0x402   :  { %v997_v45 = vadd.f32 %v949_v2, %v2573_v6  ;;  %v999_v8 = vadd.f32 %v990_v43, %v2576_v5 }
 0x403   :  { %v951_v63 = vpop.f32.mrf.mxu0  ;;  %v992_v58 = vpop.f32.mrf.mxu1 }
 0x404   :  { %v1633_v44 = vmul.f32 -1.442695, %v997_v45  ;;  %v998_v56 = vadd.f32 %v951_v63, %v2574_v54  ;;  %v1000_v7 = vadd.f32 %v992_v58, %v2575_v48 }
 0x405   :  { %v953_v60 = vpop.f32.mrf.mxu0  ;;  %v994_v1 = vpop.f32.mrf.mxu1 }
 0x406   :  { %1766 = vpow2.f32 %v1633_v44  ;;  %v1634_v0 = vmul.f32 -1.442695, %v998_v56  ;;  %v1635_v49 = vmul.f32 -1.442695, %v1000_v7 }
 0x407   :  { %v954_v50 = vpop.f32.mrf.mxu0  ;;  %v995_v51 = vpop.f32.mrf.mxu1 }
 0x408   :  { %1768 = vpow2.f32 %v1634_v0 }
 0x409   :  { %1770 = vtanh.f32 %v999_v8 }
 0x40a   :  { %1772 = vpow2.f32 %v1635_v49 }
 0x413   :  { %v1767_v35 = vpop.eup %1766 }
 0x414   :  { %v1004_v62 = vadd.f32 1.0, %v1767_v35  ;;  %v2418_v35 = vld [vmem:[#allocation10 + $0xe0] ss:$16 sps:$4 sm:$0xff]  }
 0x415   :  { %v1769_v53 = vpop.eup %1768 }
 0x416   :  { %1774 = vrcp.f32 %v1004_v62  ;;  %v1010_v61 = vadd.f32 1.0, %v1769_v53  ;;  %v1771_v55 = vpop.eup %1770  ;;  %v2421_v62 = vld [vmem:[#allocation10 + $0xe8] ss:$16 sps:$4 sm:$0xff]   ;;  %v2424_v53 = vld [vmem:[#allocation10 + $0xc4] ss:$16 sps:$4 sm:$0xff]  }
 0x417   :  { %v1773_v59 = vpop.eup %1772 }
 0x418   :  { %1776 = vrcp.f32 %v1010_v61  ;;  %v1017_v47 = vadd.f32 1.0, %v1773_v59  ;;  %v2427_v61 = vld [vmem:[#allocation10 + $0xcc] ss:$16 sps:$4 sm:$0xff]   ;;  %v2435_v59 = vld [vmem:[#allocation10 + $0xc8] ss:$16 sps:$4 sm:$0xff]  }
 0x41a   :  { %1778 = vrcp.f32 %v1017_v47  ;;  %v2447_v47 = vld [vmem:[#allocation10 + $0xa8] ss:$16 sps:$4 sm:$0xff]  }
 0x423   :  { %v1775_v26 = vpop.eup %1774 }
 0x424   :  { %v1021_v52 = vmul.f32 %v1775_v26, %v1771_v55  ;;  %v2432_v55 = vld [vmem:[#allocation10 + $0xc0] ss:$16 sps:$4 sm:$0xff]   ;;  %v2438_v26 = vld [vmem:[#allocation10 + $0xa4] ss:$16 sps:$4 sm:$0xff]  }
 0x425   :  { %v1777_v3 = vpop.eup %1776 }
 0x426   :  { %v1020_v57 = vmul.f32 %v1777_v3, %v2327_v42  ;;  %v2444_v3 = vld [vmem:[#allocation10 + $0xa0] ss:$16 sps:$4 sm:$0xff]  }
 0x427   :  { %v1779_v43 = vpop.eup %1778 }
 0x428   :  { %v2369_v2 = vadd.f32 %v1021_v52, %v1020_v57  ;;  %v2441_v52 = vld [vmem:[#allocation10 + $0xac] ss:$16 sps:$4 sm:$0xff]   ;;  %v2450_v57 = vld [vmem:[#allocation10 + $0x84] ss:$16 sps:$4 sm:$0xff]  }
 0x42a   :  { %1780 = vtanh.f32 %v2369_v2 }
 0x437   :  { %v1781_v6 = vpop.eup %1780 }
 0x438   :  { %v1024_v45 = vmul.f32 %v1781_v6, %v1779_v43  ;;  %v2456_v43 = vld [vmem:[#allocation10 + $0x80] ss:$16 sps:$4 sm:$0xff]   ;;  %v2459_v6 = vld [vmem:[#allocation10 + $0x88] ss:$16 sps:$4 sm:$0xff]  }
 0x43a   :  { %v1039_v63 = vpack.c.bf16 %v1024_v45, %v1024_v45  ;;  %v2462_v45 = vld [vmem:[#allocation10 + $0x64] ss:$16 sps:$4 sm:$0xff]  }
 0x43c   :  { %1073 = vmatmul.mubr.bf16.vlgmr.msra.gmra.mxu0 %v1039_v63  ;;  %1114 = vmatmul.mubr.bf16.vlgmr.msra.gmra.mxu1 %v1039_v63  ;;  %v2465_v63 = vld [vmem:[#allocation10 + $0x6c] ss:$16 sps:$4 sm:$0xff]  }
 0x43d   :  { %1166 = vmatpush1.bf16.msra.mxu0 %v2008_v9  ;;  %1207 = vmatpush1.bf16.msra.mxu1 %v2011_v10  ;;  %v2404_v9 = vld [vmem:[#allocation10 + $0xe4] ss:$16 sps:$4 sm:$0xff]   ;;  %v2407_v10 = vld [vmem:[#allocation10 + $0xec] ss:$16 sps:$4 sm:$0xff]  }
 0x43e   :  { %1167 = vmatprep.subr.bf16.mxu0 %v2015_v11  ;;  %1208 = vmatprep.subr.bf16.mxu1 %v2019_v12 }
 0x43f   :  { %1197 = vmatprep.mubr.bf16.mxu0 %v2571_v46  ;;  %1238 = vmatprep.mubr.bf16.mxu1 %v2571_v46 }
 0x441   :  { %1168 = vmatpush1.bf16.msra.mxu0 %v2021_v13  ;;  %1209 = vmatpush1.bf16.msra.mxu1 %v2023_v14  ;;  %v2577_v13 = vld [vmem:[#allocation18_spill] sm:$0xff] }
 0x442   :  { %1169 = vmatprep.subr.bf16.mxu0 %v2029_v16  ;;  %1210 = vmatprep.subr.bf16.mxu1 %v2032_v17 }
 0x445   :  { %1170 = vmatpush1.bf16.msra.mxu0 %v2035_v18  ;;  %1211 = vmatpush1.bf16.msra.mxu1 %v2037_v19  ;;  %v2578_v19 = vld [vmem:[#allocation20_spill] sm:$0xff] }
 0x446   :  { %1171 = vmatprep.subr.bf16.mxu0 %v2041_v20  ;;  %1212 = vmatprep.subr.bf16.mxu1 %v2044_v21 }
 0x449   :  { %1172 = vmatpush1.bf16.msra.mxu0 %v2048_v22  ;;  %1213 = vmatpush1.bf16.msra.mxu1 %v2051_v23 }
 0x44a   :  { %1173 = vmatprep.subr.bf16.mxu0 %v2056_v24  ;;  %1214 = vmatprep.subr.bf16.mxu1 %v2060_v25 }
 0x44d   :  { %1174 = vmatpush1.bf16.msra.mxu0 %v2063_v27  ;;  %1215 = vmatpush1.bf16.msra.mxu1 %v2067_v28  ;;  %v2579_v27 = vld [vmem:[#allocation21_spill] sm:$0xff] }
 0x44e   :  { %1175 = vmatprep.subr.bf16.mxu0 %v2069_v29  ;;  %1216 = vmatprep.subr.bf16.mxu1 %v2072_v30  ;;  %v2580_v29 = vld [vmem:[#allocation19_spill] sm:$0xff] }
 0x451   :  { %1176 = vmatpush1.bf16.msra.mxu0 %v2077_v31  ;;  %1217 = vmatpush1.bf16.msra.mxu1 %v2079_v32 }
 0x452   :  { %1177 = vmatprep.subr.bf16.mxu0 %v2084_v33  ;;  %1218 = vmatprep.subr.bf16.mxu1 %v2088_v34 }
 0x455   :  { %1178 = vmatpush1.bf16.msra.mxu0 %v2091_v36  ;;  %1219 = vmatpush1.bf16.msra.mxu1 %v2095_v37 }
 0x456   :  { %1179 = vmatprep.subr.bf16.mxu0 %v2097_v38  ;;  %1220 = vmatprep.subr.bf16.mxu1 %v2100_v39 }
 0x459   :  { %1180 = vmatpush1.bf16.msra.mxu0 %v2105_v40  ;;  %1221 = vmatpush1.bf16.msra.mxu1 %v2110_v41 }
 0x45a   :  { %1290 = vmatprep.subr.bf16.mxu0 %v2404_v9  ;;  %1331 = vmatprep.subr.bf16.mxu1 %v2407_v10 }
 0x4fc   :  { %v1074_v11 = vpop.f32.mrf.mxu0  ;;  %v1115_v12 = vpop.f32.mrf.mxu1 }
 0x4fd   :  { %v1122_v14 = vadd.f32 %v1074_v11, %v2577_v13  ;;  %v1124_v30 = vadd.f32 %v1115_v12, %v2580_v29  ;;  %v2468_v11 = vld [vmem:[#allocation10 + $0x60] ss:$16 sps:$4 sm:$0xff]   ;;  %v2471_v12 = vld [vmem:[#allocation10 + $0x68] ss:$16 sps:$4 sm:$0xff]   ;;  %v2474_v13 = vld [vmem:[#allocation10 + $0x44] ss:$16 sps:$4 sm:$0xff]  }
 0x4fe   :  { %v1076_v16 = vpop.f32.mrf.mxu0  ;;  %v1117_v17 = vpop.f32.mrf.mxu1 }
 0x4ff   :  { %v1636_v18 = vmul.f32 -1.442695, %v1122_v14  ;;  %v1123_v20 = vadd.f32 %v1076_v16, %v2578_v19  ;;  %v1125_v28 = vadd.f32 %v1117_v17, %v2579_v27  ;;  %v2477_v14 = vld [vmem:[#allocation10 + $0x4c] ss:$16 sps:$4 sm:$0xff]   ;;  %v2480_v16 = vld [vmem:[#allocation10 + $0x40] ss:$16 sps:$4 sm:$0xff]  }
 0x500   :  { %v1078_v21 = vpop.f32.mrf.mxu0  ;;  %v1119_v22 = vpop.f32.mrf.mxu1  ;;  %v2483_v17 = vld [vmem:[#allocation10 + $0x48] ss:$16 sps:$4 sm:$0xff]  }
 0x501   :  { %1782 = vpow2.f32 %v1636_v18  ;;  %v1637_v23 = vmul.f32 -1.442695, %v1123_v20  ;;  %v1638_v31 = vmul.f32 -1.442695, %v1125_v28  ;;  %v2581_v19 = vld [vmem:[#allocation22_spill] sm:$0xff] }
 0x502   :  { %v1079_v24 = vpop.f32.mrf.mxu0  ;;  %v1120_v25 = vpop.f32.mrf.mxu1 }
 0x503   :  { %1784 = vpow2.f32 %v1637_v23  ;;  %v2584_v25 = vld [vmem:[#allocation23_spill] sm:$0xff] }
 0x504   :  { %1786 = vtanh.f32 %v1124_v30 }
 0x505   :  { %1788 = vpow2.f32 %v1638_v31 }
 0x50e   :  { %v1783_v32 = vpop.eup %1782 }
 0x50f   :  { %v1129_v42 = vadd.f32 1.0, %v1783_v32 }
 0x510   :  { %v1785_v58 = vpop.eup %1784 }
 0x511   :  { %1790 = vrcp.f32 %v1129_v42  ;;  %v1135_v44 = vadd.f32 1.0, %v1785_v58  ;;  %v1787_v54 = vpop.eup %1786 }
 0x512   :  { %v1789_v56 = vpop.eup %1788 }
 0x513   :  { %1792 = vrcp.f32 %v1135_v44  ;;  %v1142_v50 = vadd.f32 1.0, %v1789_v56 }
 0x515   :  { %1794 = vrcp.f32 %v1142_v50 }
 0x51e   :  { %v1791_v60 = vpop.eup %1790 }
 0x51f   :  { %v1146_v1 = vmul.f32 %v1791_v60, %v1787_v54 }
 0x520   :  { %v1793_v0 = vpop.eup %1792 }
 0x521   :  { %v1145_v51 = vmul.f32 %v1793_v0, %v2369_v2  ;;  %v2453_v2 = vld [vmem:[#allocation10 + $0x8c] ss:$16 sps:$4 sm:$0xff]  }
 0x522   :  { %v1795_v7 = vpop.eup %1794 }
 0x523   :  { %v2415_v48 = vadd.f32 %v1146_v1, %v1145_v51 }
 0x525   :  { %1796 = vtanh.f32 %v2415_v48 }
 0x532   :  { %v1797_v5 = vpop.eup %1796 }
 0x533   :  { %v1149_v8 = vmul.f32 %v1797_v5, %v1795_v7  ;;  %v1876_v5 = vld [vmem:[#allocation10 + $0x20] ss:$16 sps:$4 sm:$0xff]  }
 0x535   :  { %v1164_v49 = vpack.c.bf16 %v1149_v8, %v1149_v8  ;;  %v1877_v8 = vld [vmem:[#allocation10 + $0x28] ss:$16 sps:$4 sm:$0xff]  }
 0x537   :  { %1198 = vmatmul.mubr.bf16.vlgmr.msra.gmra.mxu0 %v1164_v49  ;;  %1239 = vmatmul.mubr.bf16.vlgmr.msra.gmra.mxu1 %v1164_v49  ;;  %v1878_v49 = vld [vmem:[#allocation10 + $0x4] ss:$16 sps:$4 sm:$0xff]  }
 0x538   :  { %1291 = vmatpush1.bf16.msra.mxu0 %v2418_v35  ;;  %1332 = vmatpush1.bf16.msra.mxu1 %v2421_v62 }
 0x539   :  { %1292 = vmatprep.subr.bf16.mxu0 %v2424_v53  ;;  %1333 = vmatprep.subr.bf16.mxu1 %v2427_v61 }
 0x53a   :  { %1322 = vmatprep.mubr.bf16.mxu0 %v2571_v46  ;;  %1363 = vmatprep.mubr.bf16.mxu1 %v2571_v46 }
 0x53c   :  { %1293 = vmatpush1.bf16.msra.mxu0 %v2432_v55  ;;  %1334 = vmatpush1.bf16.msra.mxu1 %v2435_v59 }
 0x53d   :  { %1294 = vmatprep.subr.bf16.mxu0 %v2438_v26  ;;  %1335 = vmatprep.subr.bf16.mxu1 %v2441_v52 }
 0x540   :  { %1295 = vmatpush1.bf16.msra.mxu0 %v2444_v3  ;;  %1336 = vmatpush1.bf16.msra.mxu1 %v2447_v47 }
 0x541   :  { %1296 = vmatprep.subr.bf16.mxu0 %v2450_v57  ;;  %1337 = vmatprep.subr.bf16.mxu1 %v2453_v2 }
 0x544   :  { %1297 = vmatpush1.bf16.msra.mxu0 %v2456_v43  ;;  %1338 = vmatpush1.bf16.msra.mxu1 %v2459_v6 }
 0x545   :  { %1298 = vmatprep.subr.bf16.mxu0 %v2462_v45  ;;  %1339 = vmatprep.subr.bf16.mxu1 %v2465_v63 }
 0x548   :  { %1299 = vmatpush1.bf16.msra.mxu0 %v2468_v11  ;;  %1340 = vmatpush1.bf16.msra.mxu1 %v2471_v12 }
 0x549   :  { %1300 = vmatprep.subr.bf16.mxu0 %v2474_v13  ;;  %1341 = vmatprep.subr.bf16.mxu1 %v2477_v14 }
 0x54c   :  { %1301 = vmatpush1.bf16.msra.mxu0 %v2480_v16  ;;  %1342 = vmatpush1.bf16.msra.mxu1 %v2483_v17 }
 0x54d   :  { %1302 = vmatprep.subr.bf16.mxu0 %v2084_v33  ;;  %1343 = vmatprep.subr.bf16.mxu1 %v2088_v34 }
 0x550   :  { %1303 = vmatpush1.bf16.msra.mxu0 %v2091_v36  ;;  %1344 = vmatpush1.bf16.msra.mxu1 %v2095_v37  ;;  %v2582_v37 = vld [vmem:[#allocation24_spill] sm:$0xff] }
 0x551   :  { %1304 = vmatprep.subr.bf16.mxu0 %v2097_v38  ;;  %1345 = vmatprep.subr.bf16.mxu1 %v2100_v39 }
 0x554   :  { %1305 = vmatpush1.bf16.msra.mxu0 %v2105_v40  ;;  %1346 = vmatpush1.bf16.msra.mxu1 %v2110_v41  ;;  %v2583_v41 = vld [vmem:[#allocation25_spill] sm:$0xff] }
 0x555   :  { %1415 = vmatprep.subr.bf16.mxu0 %v2404_v9  ;;  %1456 = vmatprep.subr.bf16.mxu1 %v2407_v10 }
 0x5f7   :  { %v1199_v18 = vpop.f32.mrf.mxu0  ;;  %v1240_v33 = vpop.f32.mrf.mxu1 }
 0x5f8   :  { %v1247_v34 = vadd.f32 %v1199_v18, %v2581_v19  ;;  %v1249_v10 = vadd.f32 %v1240_v33, %v2584_v25 }
 0x5f9   :  { %v1201_v20 = vpop.f32.mrf.mxu0  ;;  %v1242_v36 = vpop.f32.mrf.mxu1 }
 0x5fa   :  { %v1639_v21 = vmul.f32 -1.442695, %v1247_v34  ;;  %v1248_v22 = vadd.f32 %v1201_v20, %v2582_v37  ;;  %v1250_v9 = vadd.f32 %v1242_v36, %v2583_v41 }
 0x5fb   :  { %v1203_v38 = vpop.f32.mrf.mxu0  ;;  %v1244_v23 = vpop.f32.mrf.mxu1 }
 0x5fc   :  { %1798 = vpow2.f32 %v1639_v21  ;;  %v1640_v39 = vmul.f32 -1.442695, %v1248_v22  ;;  %v1641_v27 = vmul.f32 -1.442695, %v1250_v9 }
 0x5fd   :  { %v1204_v40 = vpop.f32.mrf.mxu0  ;;  %v1245_v24 = vpop.f32.mrf.mxu1 }
 0x5fe   :  { %1800 = vpow2.f32 %v1640_v39 }
 0x5ff   :  { %1802 = vtanh.f32 %v1249_v10 }
 0x600   :  { %1804 = vpow2.f32 %v1641_v27  ;;  %v2589_v27 = vld [vmem:[#allocation30_spill] sm:$0xff] }
 0x609   :  { %v1799_v28 = vpop.eup %1798 }
 0x60a   :  { %v1254_v29 = vadd.f32 1.0, %v1799_v28 }
 0x60b   :  { %v1801_v30 = vpop.eup %1800 }
 0x60c   :  { %1806 = vrcp.f32 %v1254_v29  ;;  %v1260_v31 = vadd.f32 1.0, %v1801_v30  ;;  %v1803_v32 = vpop.eup %1802 }
 0x60d   :  { %v1805_v42 = vpop.eup %1804 }
 0x60e   :  { %1808 = vrcp.f32 %v1260_v31  ;;  %v1267_v56 = vadd.f32 1.0, %v1805_v42 }
 0x610   :  { %1810 = vrcp.f32 %v1267_v56 }
 0x619   :  { %v1807_v58 = vpop.eup %1806 }
 0x61a   :  { %v1271_v44 = vmul.f32 %v1807_v58, %v1803_v32 }
 0x61b   :  { %v1809_v54 = vpop.eup %1808 }
 0x61c   :  { %v1270_v60 = vmul.f32 %v1809_v54, %v2415_v48  ;;  %v1875_v48 = vld [vmem:[#allocation10 + $0x2c] ss:$16 sps:$4 sm:$0xff]  }
 0x61d   :  { %v1811_v0 = vpop.eup %1810 }
 0x61e   :  { %v2501_v1 = vadd.f32 %v1271_v44, %v1270_v60 }
 0x620   :  { %1812 = vtanh.f32 %v2501_v1 }
 0x62d   :  { %v1813_v50 = vpop.eup %1812 }
 0x62e   :  { %v1274_v51 = vmul.f32 %v1813_v50, %v1811_v0 }
 0x630   :  { %v1289_v7 = vpack.c.bf16 %v1274_v51, %v1274_v51 }
 0x632   :  { %1323 = vmatmul.mubr.bf16.vlgmr.msra.gmra.mxu0 %v1289_v7  ;;  %1364 = vmatmul.mubr.bf16.vlgmr.msra.gmra.mxu1 %v1289_v7 }
 0x633   :  { %1416 = vmatpush1.bf16.msra.mxu0 %v2418_v35  ;;  %1457 = vmatpush1.bf16.msra.mxu1 %v2421_v62  ;;  %v1879_v35 = vld [vmem:[#allocation10 + $0xc] ss:$16 sps:$4 sm:$0xff]   ;;  %v1880_v62 = vld [vmem:[#allocation10] ss:$16 sps:$4 sm:$0xff]  }
 0x634   :  { %1417 = vmatprep.subr.bf16.mxu0 %v2424_v53  ;;  %1458 = vmatprep.subr.bf16.mxu1 %v2427_v61  ;;  %v1881_v53 = vld [vmem:[#allocation10 + $0x8] ss:$16 sps:$4 sm:$0xff]  }
 0x635   :  { %1447 = vmatprep.mubr.bf16.mxu0 %v2571_v46  ;;  %1488 = vmatprep.mubr.bf16.mxu1 %v2571_v46  ;;  %v1874_v46 = vld [vmem:[#allocation10 + $0x24] ss:$16 sps:$4 sm:$0xff]  }
 0x637   :  { %1418 = vmatpush1.bf16.msra.mxu0 %v2432_v55  ;;  %1459 = vmatpush1.bf16.msra.mxu1 %v2435_v59  ;;  %v2585_v59 = vld [vmem:[#allocation26_spill] sm:$0xff] }
 0x638   :  { %1419 = vmatprep.subr.bf16.mxu0 %v2438_v26  ;;  %1460 = vmatprep.subr.bf16.mxu1 %v2441_v52 }
 0x63b   :  { %1420 = vmatpush1.bf16.msra.mxu0 %v2444_v3  ;;  %1461 = vmatpush1.bf16.msra.mxu1 %v2447_v47 }
 0x63c   :  { %1421 = vmatprep.subr.bf16.mxu0 %v2450_v57  ;;  %1462 = vmatprep.subr.bf16.mxu1 %v2453_v2  ;;  %v2586_v57 = vld [vmem:[#allocation28_spill] sm:$0xff] }
 0x63f   :  { %1422 = vmatpush1.bf16.msra.mxu0 %v2456_v43  ;;  %1463 = vmatpush1.bf16.msra.mxu1 %v2459_v6 }
 0x640   :  { %1423 = vmatprep.subr.bf16.mxu0 %v2462_v45  ;;  %1464 = vmatprep.subr.bf16.mxu1 %v2465_v63 }
 0x643   :  { %1424 = vmatpush1.bf16.msra.mxu0 %v2468_v11  ;;  %1465 = vmatpush1.bf16.msra.mxu1 %v2471_v12  ;;  %v2587_v12 = vld [vmem:[#allocation29_spill] sm:$0xff] }
 0x644   :  { %1425 = vmatprep.subr.bf16.mxu0 %v2474_v13  ;;  %1466 = vmatprep.subr.bf16.mxu1 %v2477_v14  ;;  %v2588_v14 = vld [vmem:[#allocation27_spill] sm:$0xff] }
 0x647   :  { %1426 = vmatpush1.bf16.msra.mxu0 %v2480_v16  ;;  %1467 = vmatpush1.bf16.msra.mxu1 %v2483_v17 }
 0x648   :  { %1427 = vmatprep.subr.bf16.mxu0 %v1874_v46  ;;  %1468 = vmatprep.subr.bf16.mxu1 %v1875_v48 }
 0x64b   :  { %1428 = vmatpush1.bf16.msra.mxu0 %v1876_v5  ;;  %1469 = vmatpush1.bf16.msra.mxu1 %v1877_v8 }
 0x64c   :  { %1429 = vmatprep.subr.bf16.mxu0 %v1878_v49  ;;  %1470 = vmatprep.subr.bf16.mxu1 %v1879_v35 }
 0x64f   :  { %1430 = vmatpush1.bf16.msra.mxu0 %v1880_v62  ;;  %1471 = vmatpush1.bf16.msra.mxu1 %v1881_v53 }
 0x6f2   :  { %v1324_v61 = vpop.f32.mrf.mxu0  ;;  %v1365_v55 = vpop.f32.mrf.mxu1 }
 0x6f3   :  { %v1372_v26 = vadd.f32 %v1324_v61, %v2585_v59  ;;  %v1374_v16 = vadd.f32 %v1365_v55, %v2588_v14  ;;  %v1648_v59 = vld [vmem:[%s2547_s4] ss:$0 sm:$0xff] }
 0x6f4   :  { %v1326_v52 = vpop.f32.mrf.mxu0  ;;  %v1367_v3 = vpop.f32.mrf.mxu1 }
 0x6f5   :  { %v1642_v47 = vmul.f32 -1.442695, %v1372_v26  ;;  %v1373_v2 = vadd.f32 %v1326_v52, %v2586_v57  ;;  %v1375_v13 = vadd.f32 %v1367_v3, %v2587_v12  ;;  %v1649_v3 = vld [vmem:[#allocation5] ss:$0 sm:$0xff] }
 0x6f6   :  { %v1328_v43 = vpop.f32.mrf.mxu0  ;;  %v1369_v6 = vpop.f32.mrf.mxu1 }
 0x6f7   :  { %1814 = vpow2.f32 %v1642_v47  ;;  %v1643_v45 = vmul.f32 -1.442695, %v1373_v2  ;;  %v1644_v17 = vmul.f32 -1.442695, %v1375_v13 }
 0x6f8   :  { %v1329_v63 = vpop.f32.mrf.mxu0  ;;  %v1370_v11 = vpop.f32.mrf.mxu1 }
 0x6f9   :  { %1816 = vpow2.f32 %v1643_v45 }
 0x6fa   :  { %1818 = vtanh.f32 %v1374_v16 }
 0x6fb   :  { %1820 = vpow2.f32 %v1644_v17 }
 0x704   :  { %v1815_v18 = vpop.eup %1814 }
 0x705   :  { %v1379_v33 = vadd.f32 1.0, %v1815_v18 }
 0x706   :  { %v1817_v19 = vpop.eup %1816 }
 0x707   :  { %1822 = vrcp.f32 %v1379_v33  ;;  %v1385_v34 = vadd.f32 1.0, %v1817_v19  ;;  %v1819_v20 = vpop.eup %1818 }
 0x708   :  { %v1821_v36 = vpop.eup %1820 }
 0x709   :  { %1824 = vrcp.f32 %v1385_v34  ;;  %v1392_v38 = vadd.f32 1.0, %v1821_v36 }
 0x70b   :  { %1826 = vrcp.f32 %v1392_v38 }
 0x714   :  { %v1823_v21 = vpop.eup %1822 }
 0x715   :  { %v1396_v37 = vmul.f32 %v1823_v21, %v1819_v20 }
 0x716   :  { %v1825_v22 = vpop.eup %1824 }
 0x717   :  { %v1395_v23 = vmul.f32 %v1825_v22, %v2501_v1  ;;  %v2590_v1 = vld [vmem:[#allocation31_spill] sm:$0xff] }
 0x718   :  { %v1827_v40 = vpop.eup %1826 }
 0x719   :  { %v1397_v39 = vadd.f32 %v1396_v37, %v1395_v23 }
 0x71b   :  { %1828 = vtanh.f32 %v1397_v39 }
 0x728   :  { %v1829_v24 = vpop.eup %1828 }
 0x729   :  { %v1399_v41 = vmul.f32 %v1829_v24, %v1827_v40 }
 0x72b   :  { %v1414_v9 = vpack.c.bf16 %v1399_v41, %v1399_v41 }
 0x72d   :  { %1448 = vmatmul.mubr.bf16.vlgmr.msra.gmra.mxu0 %v1414_v9  ;;  %1489 = vmatmul.mubr.bf16.vlgmr.msra.gmra.mxu1 %v1414_v9 }
 0x7ed   :  { %v1449_v25 = vpop.f32.mrf.mxu0  ;;  %v1490_v10 = vpop.f32.mrf.mxu1 }
 0x7ee   :  { %v1497_v28 = vadd.f32 %v1449_v25, %v2589_v27  ;;  %v1499_v0 = vadd.f32 %v1490_v10, %v2590_v1 }
 0x7ef   :  { %v1451_v29 = vpop.f32.mrf.mxu0  ;;  %v1492_v30 = vpop.f32.mrf.mxu1 }
 0x7f0   :  { %v1645_v31 = vmul.f32 -1.442695, %v1497_v28  ;;  %v1498_v32 = vadd.f32 %v1451_v29, %v2233_v4  ;;  %v1500_v60 = vadd.f32 %v1492_v30, %v2236_v15 }
 0x7f1   :  { %v1453_v42 = vpop.f32.mrf.mxu0  ;;  %v1494_v58 = vpop.f32.mrf.mxu1 }
 0x7f2   :  { %1830 = vpow2.f32 %v1645_v31  ;;  %v1646_v44 = vmul.f32 -1.442695, %v1498_v32  ;;  %v1647_v50 = vmul.f32 -1.442695, %v1500_v60 }
 0x7f3   :  { %v1454_v54 = vpop.f32.mrf.mxu0  ;;  %v1495_v56 = vpop.f32.mrf.mxu1 }
 0x7f4   :  { %1832 = vpow2.f32 %v1646_v44 }
 0x7f5   :  { %1834 = vtanh.f32 %v1499_v0 }
 0x7f6   :  { %1836 = vpow2.f32 %v1647_v50 }
 0x7ff   :  { %v1831_v51 = vpop.eup %1830 }
 0x800   :  { %v1504_v7 = vadd.f32 1.0, %v1831_v51 }
 0x801   :  { %v1833_v46 = vpop.eup %1832 }
 0x802   :  { %1838 = vrcp.f32 %v1504_v7  ;;  %v1510_v48 = vadd.f32 1.0, %v1833_v46  ;;  %v1835_v4 = vpop.eup %1834 }
 0x803   :  { %v1837_v5 = vpop.eup %1836 }
 0x804   :  { %1840 = vrcp.f32 %v1510_v48  ;;  %v1517_v62 = vadd.f32 1.0, %v1837_v5 }
 0x806   :  { %1842 = vrcp.f32 %v1517_v62 }
 0x80f   :  { %v1839_v8 = vpop.eup %1838 }
 0x810   :  { %v1521_v49 = vmul.f32 %v1839_v8, %v1835_v4 }
 0x811   :  { %v1841_v35 = vpop.eup %1840 }
 0x812   :  { %v1520_v53 = vmul.f32 %v1841_v35, %v1397_v39 }
 0x813   :  { %v1843_v15 = vpop.eup %1842 }
 0x814   :  { %v1522_v61 = vadd.f32 %v1521_v49, %v1520_v53 }
 0x816   :  { %1844 = vtanh.f32 %v1522_v61 }
 0x823   :  { %v1845_v55 = vpop.eup %1844 }
 0x824   :  { %v1524_v26 = vmul.f32 %v1845_v55, %v1843_v15 }
 0x826   :  { %v1544_v52 = vmul.f32 %v1648_v59, %v1524_v26 }
 0x828   :  { %1545 = vadd.xlane.f32.xlu0 %v1544_v52 }
 0x8b1   :  { %v1546_v47 = vpop.xlane.xlu0 %1545 }
 0x8b2   :  { %v1554_v57 = vadd.f32 %v1649_v3, %v1546_v47 }
 0x8b4   :  { %v1650_v2 = vmul.f32 -1.442695, %v1554_v57 }
 0x8b6   :  { %1846 = vpow2.f32 %v1650_v2 }
 0x8c3   :  { %v1847_v43 = vpop.eup %1846 }
 0x8c4   :  { %v1558_v6 = vadd.f32 1.0, %v1847_v43 }
 0x8c6   :  { %1848 = vrcp.f32 %v1558_v6 }
 0x8d3   :  { %v1849_v45 = vpop.eup %1848 }
 0x8d4   :  { %1562 = vst.msk [vmem:[%s2549_s6] sm:$0xff] %vm1561_vm1, %v1849_v45 }
 0x8d5   :  { %1567 = vsyncpa [#allocation7], 1 }
 0x8d6   :  { %1568 = vsyncpa [#allocation9], 1 }

</bundles_post_ra>
